<compile_context>
chip_gen: v7x
topology: tpu7x:2x2x1
jax: 0.10.0
libtpu: 0.0.40
codegen_flags: <defaults>
</compile_context>

<pallas_src>
import jax
import jax.numpy as jnp
from jax.experimental import pallas as pl
from jax.experimental.pallas import tpu as pltpu

# ----------------------------- model constants ------------------------------
B = 2            # batch
C = 3            # image channels (CLIP takes RGB)
IMG = 16         # image height/width
PATCH = 8        # ViT patch size
GRID = IMG // PATCH
N_PATCH = GRID * GRID          # 4 patches per image
SEQ = N_PATCH + 1              # + class token = 5
WIDTH = 32                     # transformer width
HEADS = 4
DHEAD = WIDTH // HEADS
MLP = 4 * WIDTH                # 128
OUTPUT_DIM = 16                # model.visual.output_dim
NUM_CLASSES = 5                # len(categories)
LANES = 128                    # TPU lane width; HBM outputs padded to this

# MXU operand dtype. float32 == exact parity with the PyTorch forward at this
# toy width; flip to jnp.bfloat16 on v6e/v7x at real CLIP widths (f32 accum is
# kept through preferred_element_type).
MXU_DTYPE = jnp.float32


# ------------------------------ in-kernel helpers ----------------------------
def _mm(a, b):
    """MXU matmul with f32 accumulation (operands optionally bf16)."""
    return jnp.dot(a.astype(MXU_DTYPE), b.astype(MXU_DTYPE),
                   preferred_element_type=jnp.float32)


def _layernorm(x, g, b):
    """LayerNorm over the last axis, f32 statistics, eps=1e-5 (CLIP)."""
    mu = jnp.mean(x, axis=-1, keepdims=True)
    var = jnp.mean(jnp.square(x - mu), axis=-1, keepdims=True)
    return (x - mu) * jax.lax.rsqrt(var + 1e-5) * g + b


# ------------------------- fused encoder kernel (1 image / step) -------------
def _encoder_kernel(patches_ref, w_patch_ref, pos_cls_ref,
                    ln_pre_g_ref, ln_pre_b_ref,
                    ln1_g_ref, ln1_b_ref,
                    q_w_ref, k_w_ref, v_w_ref,
                    q_b_ref, k_b_ref, v_b_ref,
                    attn_w_ref, attn_b_ref,
                    ln2_g_ref, ln2_b_ref, fc_w_ref, fc_b_ref,
                    proj_w_ref, proj_b_ref,
                    ln_post_g_ref, ln_post_b_ref, vis_proj_ref,
                    out_ref):
    """Whole frozen ViT encoder for one image; all intermediates stay on-chip."""
    # --- patch embedding (Conv2d bias=False as a matmul).  Row 0 of the
    # patch matrix is all-zero, so row 0 of `tok` is zero and the class
    # embedding (folded into pos_cls row 0) supplies the class token. --------
    tok = _mm(patches_ref[0], w_patch_ref[...])                  # (SEQ, WIDTH)
    xs = tok + pos_cls_ref[...]
    xs = _layernorm(xs, ln_pre_g_ref[...], ln_pre_b_ref[...])

    # --- transformer residual block: multi-head self-attention --------------
    h = _layernorm(xs, ln1_g_ref[...], ln1_b_ref[...])
    scale = 1.0 / float(DHEAD) ** 0.5
    q = (_mm(h, q_w_ref[...]) + q_b_ref[...]) * scale            # scale folded into q
    k = _mm(h, k_w_ref[...]) + k_b_ref[...]
    v = _mm(h, v_w_ref[...]) + v_b_ref[...]

    attn_out = jnp.zeros((SEQ, WIDTH), jnp.float32)
    for hh in range(HEADS):                                      # static unroll (4 heads)
        lo, hi = hh * DHEAD, (hh + 1) * DHEAD
        qh, kh, vh = q[:, lo:hi], k[:, lo:hi], v[:, lo:hi]
        s = jnp.einsum("qd,kd->qk", qh.astype(MXU_DTYPE), kh.astype(MXU_DTYPE),
                       preferred_element_type=jnp.float32)       # (SEQ, SEQ)
        p = jnp.exp(s - jnp.max(s, axis=-1, keepdims=True))
        p = p * pl.reciprocal(jnp.sum(p, axis=-1, keepdims=True), approx=True)
        ctx = _mm(p, vh)                                         # (SEQ, DHEAD)
        # Accumulate the output projection per head -> no lane concat needed.
        attn_out = attn_out + _mm(ctx, attn_w_ref[lo:hi, :])     # (SEQ, WIDTH)
    xs = xs + attn_out + attn_b_ref[...]                         # residual

    # --- transformer residual block: MLP (QuickGELU) ------------------------
    h = _layernorm(xs, ln2_g_ref[...], ln2_b_ref[...])
    h = _mm(h, fc_w_ref[...]) + fc_b_ref[...]                    # (SEQ, MLP)
    h = h * jax.nn.sigmoid(1.702 * h)                            # QuickGELU
    xs = xs + _mm(h, proj_w_ref[...]) + proj_b_ref[...]          # residual

    # --- class token -> ln_post -> lane-padded visual projection ------------
    cls_tok = _layernorm(xs[0:1, :], ln_post_g_ref[...], ln_post_b_ref[...])
    out_ref[0] = _mm(cls_tok, vis_proj_ref[...])                 # (1, LANES), lane-dense


# ------------------------- classifier kernel (trainable head) ----------------
def _classifier_kernel(f_ref, w_ref, b_ref, o_ref):
    o_ref[...] = _mm(f_ref[...], w_ref[...]) + b_ref[...]


# ------------------------------ kernel wrappers -------------------------------
def encode_image(params, x):
    """Synthetic CLIP-style ViT encoder.  x: NCHW f32 -> (B, OUTPUT_DIM) f32."""
    b, c, hh, ww = x.shape
    gh, gw = hh // PATCH, ww // PATCH
    n_patch = gh * gw
    patch_dim = c * PATCH * PATCH

    # Patch extraction (pure reshape/transpose glue — stays in XLA), plus a
    # leading all-zero row standing in for the class token position.
    patches = x.reshape(b, c, gh, PATCH, gw, PATCH)
    patches = patches.transpose(0, 2, 4, 1, 3, 5).reshape(b, n_patch, patch_dim)
    patches = jnp.pad(patches, ((0, 0), (1, 0), (0, 0)))             # (b, SEQ, patch_dim)

    w_patch = params["conv1_w"].reshape(WIDTH, patch_dim).T          # (patch_dim, WIDTH)
    # Fold the class embedding into row 0 of the positional embedding.
    cls_rows = jnp.pad(params["class_emb"][None, :], ((0, SEQ - 1), (0, 0)))
    pos_cls = params["pos_emb"] + cls_rows                           # (SEQ, WIDTH)
    # Split fused qkv so the kernel never lane-slices a (SEQ, 3*WIDTH) value.
    qkv_w, qkv_b = params["qkv_w"], params["qkv_b"]
    q_w, k_w, v_w = qkv_w[:, :WIDTH], qkv_w[:, WIDTH:2 * WIDTH], qkv_w[:, 2 * WIDTH:]
    q_b, k_b, v_b = qkv_b[:WIDTH], qkv_b[WIDTH:2 * WIDTH], qkv_b[2 * WIDTH:]
    # Zero-pad the visual projection to 128 output columns -> unmasked stores.
    vis_proj_pad = jnp.pad(params["visual_proj"],
                           ((0, 0), (0, LANES - OUTPUT_DIM)))        # (WIDTH, LANES)

    def r2(v):                                                       # 1D param -> (1, D)
        return v.reshape(1, -1)

    weights = [
        w_patch, pos_cls,
        r2(params["ln_pre_g"]), r2(params["ln_pre_b"]),
        r2(params["ln1_g"]), r2(params["ln1_b"]),
        q_w, k_w, v_w, r2(q_b), r2(k_b), r2(v_b),
        params["attn_out_w"], r2(params["attn_out_b"]),
        r2(params["ln2_g"]), r2(params["ln2_b"]),
        params["fc_w"], r2(params["fc_b"]),
        params["proj_w"], r2(params["proj_b"]),
        r2(params["ln_post_g"]), r2(params["ln_post_b"]),
        vis_proj_pad,
    ]

    def full(a):   # whole-array block, identical for every grid step (fetched once)
        return pl.BlockSpec(a.shape, lambda i, _nd=a.ndim: (0,) * _nd)

    feats_slab = pl.pallas_call(
        _encoder_kernel,
        out_shape=jax.ShapeDtypeStruct((b, 1, LANES), jnp.float32),
        grid=(b,),
        in_specs=[pl.BlockSpec((1, SEQ, patch_dim), lambda i: (i, 0, 0))]
                 + [full(a) for a in weights],
        out_specs=pl.BlockSpec((1, 1, LANES), lambda i: (i, 0, 0)),
        compiler_params=pltpu.CompilerParams(
            dimension_semantics=("parallel",)),   # v7x: batch sharded over 2 TCs
    )(patches, *weights)

    return feats_slab[:, 0, :OUTPUT_DIM]                             # (B, OUTPUT_DIM)


def classifier_head(features, cls_w, cls_b):
    """Trainable nn.Linear(OUTPUT_DIM, NUM_CLASSES), lane-padded to 128 columns."""
    m, k = features.shape
    n = cls_w.shape[1]
    w_pad = jnp.pad(cls_w, ((0, 0), (0, LANES - n)))                 # (k, LANES)
    b_pad = jnp.pad(cls_b, (0, LANES - n)).reshape(1, LANES)
    logits_pad = pl.pallas_call(
        _classifier_kernel,
        out_shape=jax.ShapeDtypeStruct((m, LANES), jnp.float32),
        grid=(1,),
        in_specs=[pl.BlockSpec((m, k), lambda i: (0, 0)),
                  pl.BlockSpec((k, LANES), lambda i: (0, 0)),
                  pl.BlockSpec((1, LANES), lambda i: (0, 0))],
        out_specs=pl.BlockSpec((m, LANES), lambda i: (0, 0)),
    )(features, w_pad, b_pad)
    return logits_pad[:, :n]                                         # (B, NUM_CLASSES)


# ------------------------------ parameter init -------------------------------
def init_params(key):
    ks = jax.random.split(key, 16)

    def nrm(k, shape, scale=0.02):
        return scale * jax.random.normal(k, shape, jnp.float32)

    return {
        # visual encoder (synthetic, frozen)
        "conv1_w": nrm(ks[0], (WIDTH, C, PATCH, PATCH)),        # Conv2d, bias=False
        "class_emb": nrm(ks[1], (WIDTH,)),
        "pos_emb": nrm(ks[2], (SEQ, WIDTH)),
        "ln_pre_g": jnp.ones((WIDTH,), jnp.float32),
        "ln_pre_b": jnp.zeros((WIDTH,), jnp.float32),
        # transformer resblock
        "ln1_g": jnp.ones((WIDTH,), jnp.float32),
        "ln1_b": jnp.zeros((WIDTH,), jnp.float32),
        "qkv_w": nrm(ks[3], (WIDTH, 3 * WIDTH)),
        "qkv_b": jnp.zeros((3 * WIDTH,), jnp.float32),
        "attn_out_w": nrm(ks[4], (WIDTH, WIDTH)),
        "attn_out_b": jnp.zeros((WIDTH,), jnp.float32),
        "ln2_g": jnp.ones((WIDTH,), jnp.float32),
        "ln2_b": jnp.zeros((WIDTH,), jnp.float32),
        "fc_w": nrm(ks[5], (WIDTH, MLP)),
        "fc_b": jnp.zeros((MLP,), jnp.float32),
        "proj_w": nrm(ks[6], (MLP, WIDTH)),
        "proj_b": jnp.zeros((WIDTH,), jnp.float32),
        # post-transformer
        "ln_post_g": jnp.ones((WIDTH,), jnp.float32),
        "ln_post_b": jnp.zeros((WIDTH,), jnp.float32),
        "visual_proj": nrm(ks[7], (WIDTH, OUTPUT_DIM)),
        # classifier head (the trainable nn.Linear(output_dim, num_classes))
        "cls_w": nrm(ks[8], (OUTPUT_DIM, NUM_CLASSES)),
        "cls_b": jnp.zeros((NUM_CLASSES,), jnp.float32),
    }


# ------------------------------- forward pass --------------------------------
@jax.jit
def clip_finetuner_forward(params, x):
    # with torch.no_grad(): features = self.model.encode_image(x).float()
    features = jax.lax.stop_gradient(encode_image(params, x)).astype(jnp.float32)
    # return self.classifier(features)
    return classifier_head(features, params["cls_w"], params["cls_b"])


# ----------------------------------- main ------------------------------------
if __name__ == "__main__":
    key = jax.random.PRNGKey(0)
    k_param, k_x = jax.random.split(key)
    params = init_params(k_param)
    x = jax.random.normal(k_x, (B, C, IMG, IMG), jnp.float32)   # NCHW, like PyTorch

    logits = clip_finetuner_forward(params, x)
    jax.block_until_ready(logits)

    assert logits.shape == (B, NUM_CLASSES)
    assert logits.dtype == jnp.float32
    print("KERNEL_OK")
</pallas_src>

<mosaic_0001>
module attributes {stable_mosaic.version = 11 : i64} {
  func.func @_classifier_kernel(%arg0: i32, %arg1: memref<2x16xf32, #tpu.memory_space<vmem>>, %arg2: memref<16x128xf32, #tpu.memory_space<vmem>>, %arg3: memref<1x128xf32, #tpu.memory_space<vmem>>, %arg4: memref<2x128xf32, #tpu.memory_space<vmem>>) attributes {dimension_semantics = [#tpu.dimension_semantics<arbitrary>], iteration_bounds = array<i64: 1>, scalar_prefetch = 0 : i64, scratch_operands = 0 : i64, tpu.core_type = #tpu.core_type<tc>, window_params = [{pipeline_mode = #tpu.pipeline_mode<synchronous>, transform_indices = @transform_0, window_bounds = array<i64: 2, 16>}, {pipeline_mode = #tpu.pipeline_mode<synchronous>, transform_indices = @transform_1, window_bounds = array<i64: 16, 128>}, {pipeline_mode = #tpu.pipeline_mode<synchronous>, transform_indices = @transform_2, window_bounds = array<i64: 1, 128>}, {pipeline_mode = #tpu.pipeline_mode<synchronous>, transform_indices = @transform_3, window_bounds = array<i64: 2, 128>}]} {
    %c0 = arith.constant 0 : index
    %c0_0 = arith.constant 0 : index
    %0 = vector.load %arg1[%c0, %c0_0] : memref<2x16xf32, #tpu.memory_space<vmem>>, vector<2x16xf32>
    %c0_1 = arith.constant 0 : index
    %c0_2 = arith.constant 0 : index
    %1 = vector.load %arg2[%c0_1, %c0_2] : memref<16x128xf32, #tpu.memory_space<vmem>>, vector<16x128xf32>
    %cst = arith.constant dense<0.000000e+00> : vector<2x128xf32>
    %2 = tpu.matmul %0, %1, %cst {dimension_numbers = #tpu.dot_dimension_numbers<[1], [0], [0], [1], [0, 0, 1, 1], [], []>} : vector<2x16xf32>, vector<16x128xf32>, vector<2x128xf32> -> vector<2x128xf32>
    %c0_3 = arith.constant 0 : index
    %c0_4 = arith.constant 0 : index
    %3 = vector.load %arg3[%c0_3, %c0_4] : memref<1x128xf32, #tpu.memory_space<vmem>>, vector<1x128xf32>
    %4 = vector.broadcast %3 : vector<1x128xf32> to vector<2x128xf32>
    %5 = arith.addf %2, %4 : vector<2x128xf32>
    %c0_5 = arith.constant 0 : index
    %c0_6 = arith.constant 0 : index
    %6 = vector.load %arg4[%c0_5, %c0_6] : memref<2x128xf32, #tpu.memory_space<vmem>>, vector<2x128xf32>
    tpu.vector_store %arg4[%c0_5, %c0_6], %5 {strides = array<i32>} : memref<2x128xf32, #tpu.memory_space<vmem>>, vector<2x128xf32>,
    return
  }
  func.func @transform_0(%arg0: i32) -> (i32, i32) {
    %c0_i32 = arith.constant 0 : i32
    %c0_i32_0 = arith.constant 0 : i32
    %c0_i32_1 = arith.constant 0 : i32
    return %c0_i32, %c0_i32_0 : i32, i32
  }
  func.func @transform_1(%arg0: i32) -> (i32, i32) {
    %c0_i32 = arith.constant 0 : i32
    %c0_i32_0 = arith.constant 0 : i32
    %c0_i32_1 = arith.constant 0 : i32
    return %c0_i32, %c0_i32_0 : i32, i32
  }
  func.func @transform_2(%arg0: i32) -> (i32, i32) {
    %c0_i32 = arith.constant 0 : i32
    %c0_i32_0 = arith.constant 0 : i32
    %c0_i32_1 = arith.constant 0 : i32
    return %c0_i32, %c0_i32_0 : i32, i32
  }
  func.func @transform_3(%arg0: i32) -> (i32, i32) {
    %c0_i32 = arith.constant 0 : i32
    %c0_i32_0 = arith.constant 0 : i32
    %c0_i32_1 = arith.constant 0 : i32
    return %c0_i32, %c0_i32_0 : i32, i32
  }
}

module attributes {stable_mosaic.version = 11 : i64} {
  func.func @_encoder_kernel(%arg0: i32, %arg1: memref<1x5x192xf32, #tpu.memory_space<vmem>>, %arg2: memref<192x32xf32, #tpu.memory_space<vmem>>, %arg3: memref<5x32xf32, #tpu.memory_space<vmem>>, %arg4: memref<1x32xf32, #tpu.memory_space<vmem>>, %arg5: memref<1x32xf32, #tpu.memory_space<vmem>>, %arg6: memref<1x32xf32, #tpu.memory_space<vmem>>, %arg7: memref<1x32xf32, #tpu.memory_space<vmem>>, %arg8: memref<32x32xf32, #tpu.memory_space<vmem>>, %arg9: memref<32x32xf32, #tpu.memory_space<vmem>>, %arg10: memref<32x32xf32, #tpu.memory_space<vmem>>, %arg11: memref<1x32xf32, #tpu.memory_space<vmem>>, %arg12: memref<1x32xf32, #tpu.memory_space<vmem>>, %arg13: memref<1x32xf32, #tpu.memory_space<vmem>>, %arg14: memref<32x32xf32, #tpu.memory_space<vmem>>, %arg15: memref<1x32xf32, #tpu.memory_space<vmem>>, %arg16: memref<1x32xf32, #tpu.memory_space<vmem>>, %arg17: memref<1x32xf32, #tpu.memory_space<vmem>>, %arg18: memref<32x128xf32, #tpu.memory_space<vmem>>, %arg19: memref<1x128xf32, #tpu.memory_space<vmem>>, %arg20: memref<128x32xf32, #tpu.memory_space<vmem>>, %arg21: memref<1x32xf32, #tpu.memory_space<vmem>>, %arg22: memref<1x32xf32, #tpu.memory_space<vmem>>, %arg23: memref<1x32xf32, #tpu.memory_space<vmem>>, %arg24: memref<32x128xf32, #tpu.memory_space<vmem>>, %arg25: memref<1x1x128xf32, #tpu.memory_space<vmem>>) attributes {dimension_semantics = [#tpu.dimension_semantics<parallel>], iteration_bounds = array<i64: 2>, scalar_prefetch = 0 : i64, scratch_operands = 0 : i64, tpu.core_type = #tpu.core_type<tc>, window_params = [{transform_indices = @transform_0, window_bounds = array<i64: 1, 5, 192>}, {pipeline_mode = #tpu.pipeline_mode<synchronous>, transform_indices = @transform_1, window_bounds = array<i64: 192, 32>}, {pipeline_mode = #tpu.pipeline_mode<synchronous>, transform_indices = @transform_2, window_bounds = array<i64: 5, 32>}, {pipeline_mode = #tpu.pipeline_mode<synchronous>, transform_indices = @transform_3, window_bounds = array<i64: 1, 32>}, {pipeline_mode = #tpu.pipeline_mode<synchronous>, transform_indices = @transform_4, window_bounds = array<i64: 1, 32>}, {pipeline_mode = #tpu.pipeline_mode<synchronous>, transform_indices = @transform_5, window_bounds = array<i64: 1, 32>}, {pipeline_mode = #tpu.pipeline_mode<synchronous>, transform_indices = @transform_6, window_bounds = array<i64: 1, 32>}, {pipeline_mode = #tpu.pipeline_mode<synchronous>, transform_indices = @transform_7, window_bounds = array<i64: 32, 32>}, {pipeline_mode = #tpu.pipeline_mode<synchronous>, transform_indices = @transform_8, window_bounds = array<i64: 32, 32>}, {pipeline_mode = #tpu.pipeline_mode<synchronous>, transform_indices = @transform_9, window_bounds = array<i64: 32, 32>}, {pipeline_mode = #tpu.pipeline_mode<synchronous>, transform_indices = @transform_10, window_bounds = array<i64: 1, 32>}, {pipeline_mode = #tpu.pipeline_mode<synchronous>, transform_indices = @transform_11, window_bounds = array<i64: 1, 32>}, {pipeline_mode = #tpu.pipeline_mode<synchronous>, transform_indices = @transform_12, window_bounds = array<i64: 1, 32>}, {pipeline_mode = #tpu.pipeline_mode<synchronous>, transform_indices = @transform_13, window_bounds = array<i64: 32, 32>}, {pipeline_mode = #tpu.pipeline_mode<synchronous>, transform_indices = @transform_14, window_bounds = array<i64: 1, 32>}, {pipeline_mode = #tpu.pipeline_mode<synchronous>, transform_indices = @transform_15, window_bounds = array<i64: 1, 32>}, {pipeline_mode = #tpu.pipeline_mode<synchronous>, transform_indices = @transform_16, window_bounds = array<i64: 1, 32>}, {pipeline_mode = #tpu.pipeline_mode<synchronous>, transform_indices = @transform_17, window_bounds = array<i64: 32, 128>}, {pipeline_mode = #tpu.pipeline_mode<synchronous>, transform_indices = @transform_18, window_bounds = array<i64: 1, 128>}, {pipeline_mode = #tpu.pipeline_mode<synchronous>, transform_indices = @transform_19, window_bounds = array<i64: 128, 32>}, {pipeline_mode = #tpu.pipeline_mode<synchronous>, transform_indices = @transform_20, window_bounds = array<i64: 1, 32>}, {pipeline_mode = #tpu.pipeline_mode<synchronous>, transform_indices = @transform_21, window_bounds = array<i64: 1, 32>}, {pipeline_mode = #tpu.pipeline_mode<synchronous>, transform_indices = @transform_22, window_bounds = array<i64: 1, 32>}, {pipeline_mode = #tpu.pipeline_mode<synchronous>, transform_indices = @transform_23, window_bounds = array<i64: 32, 128>}, {transform_indices = @transform_24, window_bounds = array<i64: 1, 1, 128>}]} {
    %c0 = arith.constant 0 : index
    %c0_0 = arith.constant 0 : index
    %c0_1 = arith.constant 0 : index
    %0 = vector.load %arg1[%c0, %c0_0, %c0_1] : memref<1x5x192xf32, #tpu.memory_space<vmem>>, vector<1x5x192xf32>
    %1 = vector.shape_cast %0 : vector<1x5x192xf32> to vector<5x192xf32>
    %c0_2 = arith.constant 0 : index
    %c0_3 = arith.constant 0 : index
    %2 = vector.load %arg2[%c0_2, %c0_3] : memref<192x32xf32, #tpu.memory_space<vmem>>, vector<192x32xf32>
    %cst = arith.constant dense<0.000000e+00> : vector<5x32xf32>
    %3 = tpu.matmul %1, %2, %cst {dimension_numbers = #tpu.dot_dimension_numbers<[1], [0], [0], [1], [0, 0, 1, 1], [], []>} : vector<5x192xf32>, vector<192x32xf32>, vector<5x32xf32> -> vector<5x32xf32>
    %c0_4 = arith.constant 0 : index
    %c0_5 = arith.constant 0 : index
    %4 = vector.load %arg3[%c0_4, %c0_5] : memref<5x32xf32, #tpu.memory_space<vmem>>, vector<5x32xf32>
    %5 = arith.addf %3, %4 : vector<5x32xf32>
    %c0_6 = arith.constant 0 : index
    %c0_7 = arith.constant 0 : index
    %6 = vector.load %arg4[%c0_6, %c0_7] : memref<1x32xf32, #tpu.memory_space<vmem>>, vector<1x32xf32>
    %c0_8 = arith.constant 0 : index
    %c0_9 = arith.constant 0 : index
    %7 = vector.load %arg5[%c0_8, %c0_9] : memref<1x32xf32, #tpu.memory_space<vmem>>, vector<1x32xf32>
    %cst_10 = arith.constant dense<0.000000e+00> : vector<5xf32>
    %8 = vector.multi_reduction <add>, %5, %cst_10 [1] : vector<5x32xf32> to vector<5xf32>
    %9 = vector.shape_cast %8 : vector<5xf32> to vector<5x1xf32>
    %cst_11 = arith.constant 3.200000e+01 : f32
    %10 = vector.broadcast %cst_11 : f32 to vector<5x1xf32>
    %11 = arith.divf %9, %10 : vector<5x1xf32>
    %12 = vector.broadcast %11 : vector<5x1xf32> to vector<5x32xf32>
    %13 = arith.subf %5, %12 : vector<5x32xf32>
    %14 = arith.mulf %13, %13 : vector<5x32xf32>
    %cst_12 = arith.constant dense<0.000000e+00> : vector<5xf32>
    %15 = vector.multi_reduction <add>, %14, %cst_12 [1] : vector<5x32xf32> to vector<5xf32>
    %16 = vector.shape_cast %15 : vector<5xf32> to vector<5x1xf32>
    %cst_13 = arith.constant 3.200000e+01 : f32
    %17 = vector.broadcast %cst_13 : f32 to vector<5x1xf32>
    %18 = arith.divf %16, %17 : vector<5x1xf32>
    %19 = vector.broadcast %11 : vector<5x1xf32> to vector<5x32xf32>
    %20 = arith.subf %5, %19 : vector<5x32xf32>
    %cst_14 = arith.constant 9.99999974E-6 : f32
    %21 = vector.broadcast %cst_14 : f32 to vector<5x1xf32>
    %22 = arith.addf %18, %21 : vector<5x1xf32>
    %23 = math.rsqrt %22 : vector<5x1xf32>
    %24 = vector.broadcast %23 : vector<5x1xf32> to vector<5x32xf32>
    %25 = arith.mulf %20, %24 : vector<5x32xf32>
    %26 = vector.broadcast %6 : vector<1x32xf32> to vector<5x32xf32>
    %27 = arith.mulf %25, %26 : vector<5x32xf32>
    %28 = vector.broadcast %7 : vector<1x32xf32> to vector<5x32xf32>
    %29 = arith.addf %27, %28 : vector<5x32xf32>
    %c0_15 = arith.constant 0 : index
    %c0_16 = arith.constant 0 : index
    %30 = vector.load %arg6[%c0_15, %c0_16] : memref<1x32xf32, #tpu.memory_space<vmem>>, vector<1x32xf32>
    %c0_17 = arith.constant 0 : index
    %c0_18 = arith.constant 0 : index
    %31 = vector.load %arg7[%c0_17, %c0_18] : memref<1x32xf32, #tpu.memory_space<vmem>>, vector<1x32xf32>
    %cst_19 = arith.constant dense<0.000000e+00> : vector<5xf32>
    %32 = vector.multi_reduction <add>, %29, %cst_19 [1] : vector<5x32xf32> to vector<5xf32>
    %33 = vector.shape_cast %32 : vector<5xf32> to vector<5x1xf32>
    %cst_20 = arith.constant 3.200000e+01 : f32
    %34 = vector.broadcast %cst_20 : f32 to vector<5x1xf32>
    %35 = arith.divf %33, %34 : vector<5x1xf32>
    %36 = vector.broadcast %35 : vector<5x1xf32> to vector<5x32xf32>
    %37 = arith.subf %29, %36 : vector<5x32xf32>
    %38 = arith.mulf %37, %37 : vector<5x32xf32>
    %cst_21 = arith.constant dense<0.000000e+00> : vector<5xf32>
    %39 = vector.multi_reduction <add>, %38, %cst_21 [1] : vector<5x32xf32> to vector<5xf32>
    %40 = vector.shape_cast %39 : vector<5xf32> to vector<5x1xf32>
    %cst_22 = arith.constant 3.200000e+01 : f32
    %41 = vector.broadcast %cst_22 : f32 to vector<5x1xf32>
    %42 = arith.divf %40, %41 : vector<5x1xf32>
    %43 = vector.broadcast %35 : vector<5x1xf32> to vector<5x32xf32>
    %44 = arith.subf %29, %43 : vector<5x32xf32>
    %cst_23 = arith.constant 9.99999974E-6 : f32
    %45 = vector.broadcast %cst_23 : f32 to vector<5x1xf32>
    %46 = arith.addf %42, %45 : vector<5x1xf32>
    %47 = math.rsqrt %46 : vector<5x1xf32>
    %48 = vector.broadcast %47 : vector<5x1xf32> to vector<5x32xf32>
    %49 = arith.mulf %44, %48 : vector<5x32xf32>
    %50 = vector.broadcast %30 : vector<1x32xf32> to vector<5x32xf32>
    %51 = arith.mulf %49, %50 : vector<5x32xf32>
    %52 = vector.broadcast %31 : vector<1x32xf32> to vector<5x32xf32>
    %53 = arith.addf %51, %52 : vector<5x32xf32>
    %c0_24 = arith.constant 0 : index
    %c0_25 = arith.constant 0 : index
    %54 = vector.load %arg8[%c0_24, %c0_25] : memref<32x32xf32, #tpu.memory_space<vmem>>, vector<32x32xf32>
    %cst_26 = arith.constant dense<0.000000e+00> : vector<5x32xf32>
    %55 = tpu.matmul %53, %54, %cst_26 {dimension_numbers = #tpu.dot_dimension_numbers<[1], [0], [0], [1], [0, 0, 1, 1], [], []>} : vector<5x32xf32>, vector<32x32xf32>, vector<5x32xf32> -> vector<5x32xf32>
    %c0_27 = arith.constant 0 : index
    %c0_28 = arith.constant 0 : index
    %56 = vector.load %arg11[%c0_27, %c0_28] : memref<1x32xf32, #tpu.memory_space<vmem>>, vector<1x32xf32>
    %57 = vector.broadcast %56 : vector<1x32xf32> to vector<5x32xf32>
    %58 = arith.addf %55, %57 : vector<5x32xf32>
    %cst_29 = arith.constant 0.353553385 : f32
    %59 = vector.broadcast %cst_29 : f32 to vector<5x32xf32>
    %60 = arith.mulf %58, %59 : vector<5x32xf32>
    %c0_30 = arith.constant 0 : index
    %c0_31 = arith.constant 0 : index
    %61 = vector.load %arg9[%c0_30, %c0_31] : memref<32x32xf32, #tpu.memory_space<vmem>>, vector<32x32xf32>
    %cst_32 = arith.constant dense<0.000000e+00> : vector<5x32xf32>
    %62 = tpu.matmul %53, %61, %cst_32 {dimension_numbers = #tpu.dot_dimension_numbers<[1], [0], [0], [1], [0, 0, 1, 1], [], []>} : vector<5x32xf32>, vector<32x32xf32>, vector<5x32xf32> -> vector<5x32xf32>
    %c0_33 = arith.constant 0 : index
    %c0_34 = arith.constant 0 : index
    %63 = vector.load %arg12[%c0_33, %c0_34] : memref<1x32xf32, #tpu.memory_space<vmem>>, vector<1x32xf32>
    %64 = vector.broadcast %63 : vector<1x32xf32> to vector<5x32xf32>
    %65 = arith.addf %62, %64 : vector<5x32xf32>
    %c0_35 = arith.constant 0 : index
    %c0_36 = arith.constant 0 : index
    %66 = vector.load %arg10[%c0_35, %c0_36] : memref<32x32xf32, #tpu.memory_space<vmem>>, vector<32x32xf32>
    %cst_37 = arith.constant dense<0.000000e+00> : vector<5x32xf32>
    %67 = tpu.matmul %53, %66, %cst_37 {dimension_numbers = #tpu.dot_dimension_numbers<[1], [0], [0], [1], [0, 0, 1, 1], [], []>} : vector<5x32xf32>, vector<32x32xf32>, vector<5x32xf32> -> vector<5x32xf32>
    %c0_38 = arith.constant 0 : index
    %c0_39 = arith.constant 0 : index
    %68 = vector.load %arg13[%c0_38, %c0_39] : memref<1x32xf32, #tpu.memory_space<vmem>>, vector<1x32xf32>
    %69 = vector.broadcast %68 : vector<1x32xf32> to vector<5x32xf32>
    %70 = arith.addf %67, %69 : vector<5x32xf32>
    %cst_40 = arith.constant 0.000000e+00 : f32
    %71 = vector.broadcast %cst_40 : f32 to vector<5x32xf32>
    %72 = vector.extract_strided_slice %60 {offsets = [0, 0], sizes = [5, 8], strides = [1, 1]} : vector<5x32xf32> to vector<5x8xf32>
    %73 = vector.extract_strided_slice %65 {offsets = [0, 0], sizes = [5, 8], strides = [1, 1]} : vector<5x32xf32> to vector<5x8xf32>
    %74 = vector.extract_strided_slice %70 {offsets = [0, 0], sizes = [5, 8], strides = [1, 1]} : vector<5x32xf32> to vector<5x8xf32>
    "tpu.trace_start"() <{level = 10 : i32, message = "qd,kd->qk"}> : () -> ()
    %cst_41 = arith.constant dense<0.000000e+00> : vector<5x5xf32>
    %75 = tpu.matmul %72, %73, %cst_41 {dimension_numbers = #tpu.dot_dimension_numbers<[1], [1], [0], [0], [0, 0, 1, 0], [], []>} : vector<5x8xf32>, vector<5x8xf32>, vector<5x5xf32> -> vector<5x5xf32>
    "tpu.trace_stop"() : () -> ()
    %cst_42 = arith.constant dense<0xFF800000> : vector<5xf32>
    %76 = vector.multi_reduction <maximumf>, %75, %cst_42 [1] : vector<5x5xf32> to vector<5xf32>
    %77 = vector.shape_cast %76 : vector<5xf32> to vector<5x1xf32>
    %78 = vector.broadcast %77 : vector<5x1xf32> to vector<5x5xf32>
    %79 = arith.subf %75, %78 : vector<5x5xf32>
    %80 = math.exp %79 : vector<5x5xf32>
    %cst_43 = arith.constant dense<0.000000e+00> : vector<5xf32>
    %81 = vector.multi_reduction <add>, %80, %cst_43 [1] : vector<5x5xf32> to vector<5xf32>
    %82 = vector.shape_cast %81 : vector<5xf32> to vector<5x1xf32>
    %83 = tpu.reciprocal %82 {approx = true} : vector<5x1xf32> -> vector<5x1xf32>
    %84 = vector.broadcast %83 : vector<5x1xf32> to vector<5x5xf32>
    %85 = arith.mulf %80, %84 : vector<5x5xf32>
    %cst_44 = arith.constant dense<0.000000e+00> : vector<5x8xf32>
    %86 = tpu.matmul %85, %74, %cst_44 {dimension_numbers = #tpu.dot_dimension_numbers<[1], [0], [0], [1], [0, 0, 1, 1], [], []>} : vector<5x5xf32>, vector<5x8xf32>, vector<5x8xf32> -> vector<5x8xf32>
    %c0_45 = arith.constant 0 : index
    %c0_46 = arith.constant 0 : index
    %87 = vector.load %arg14[%c0_45, %c0_46] : memref<32x32xf32, #tpu.memory_space<vmem>>, vector<8x32xf32>
    %cst_47 = arith.constant dense<0.000000e+00> : vector<5x32xf32>
    %88 = tpu.matmul %86, %87, %cst_47 {dimension_numbers = #tpu.dot_dimension_numbers<[1], [0], [0], [1], [0, 0, 1, 1], [], []>} : vector<5x8xf32>, vector<8x32xf32>, vector<5x32xf32> -> vector<5x32xf32>
    %89 = arith.addf %71, %88 : vector<5x32xf32>
    %90 = vector.extract_strided_slice %60 {offsets = [0, 8], sizes = [5, 8], strides = [1, 1]} : vector<5x32xf32> to vector<5x8xf32>
    %91 = vector.extract_strided_slice %65 {offsets = [0, 8], sizes = [5, 8], strides = [1, 1]} : vector<5x32xf32> to vector<5x8xf32>
    %92 = vector.extract_strided_slice %70 {offsets = [0, 8], sizes = [5, 8], strides = [1, 1]} : vector<5x32xf32> to vector<5x8xf32>
    "tpu.trace_start"() <{level = 10 : i32, message = "qd,kd->qk"}> : () -> ()
    %cst_48 = arith.constant dense<0.000000e+00> : vector<5x5xf32>
    %93 = tpu.matmul %90, %91, %cst_48 {dimension_numbers = #tpu.dot_dimension_numbers<[1], [1], [0], [0], [0, 0, 1, 0], [], []>} : vector<5x8xf32>, vector<5x8xf32>, vector<5x5xf32> -> vector<5x5xf32>
    "tpu.trace_stop"() : () -> ()
    %cst_49 = arith.constant dense<0xFF800000> : vector<5xf32>
    %94 = vector.multi_reduction <maximumf>, %93, %cst_49 [1] : vector<5x5xf32> to vector<5xf32>
    %95 = vector.shape_cast %94 : vector<5xf32> to vector<5x1xf32>
    %96 = vector.broadcast %95 : vector<5x1xf32> to vector<5x5xf32>
    %97 = arith.subf %93, %96 : vector<5x5xf32>
    %98 = math.exp %97 : vector<5x5xf32>
    %cst_50 = arith.constant dense<0.000000e+00> : vector<5xf32>
    %99 = vector.multi_reduction <add>, %98, %cst_50 [1] : vector<5x5xf32> to vector<5xf32>
    %100 = vector.shape_cast %99 : vector<5xf32> to vector<5x1xf32>
    %101 = tpu.reciprocal %100 {approx = true} : vector<5x1xf32> -> vector<5x1xf32>
    %102 = vector.broadcast %101 : vector<5x1xf32> to vector<5x5xf32>
    %103 = arith.mulf %98, %102 : vector<5x5xf32>
    %cst_51 = arith.constant dense<0.000000e+00> : vector<5x8xf32>
    %104 = tpu.matmul %103, %92, %cst_51 {dimension_numbers = #tpu.dot_dimension_numbers<[1], [0], [0], [1], [0, 0, 1, 1], [], []>} : vector<5x5xf32>, vector<5x8xf32>, vector<5x8xf32> -> vector<5x8xf32>
    %c8 = arith.constant 8 : index
    %c0_52 = arith.constant 0 : index
    %105 = vector.load %arg14[%c8, %c0_52] : memref<32x32xf32, #tpu.memory_space<vmem>>, vector<8x32xf32>
    %cst_53 = arith.constant dense<0.000000e+00> : vector<5x32xf32>
    %106 = tpu.matmul %104, %105, %cst_53 {dimension_numbers = #tpu.dot_dimension_numbers<[1], [0], [0], [1], [0, 0, 1, 1], [], []>} : vector<5x8xf32>, vector<8x32xf32>, vector<5x32xf32> -> vector<5x32xf32>
    %107 = arith.addf %89, %106 : vector<5x32xf32>
    %108 = vector.extract_strided_slice %60 {offsets = [0, 16], sizes = [5, 8], strides = [1, 1]} : vector<5x32xf32> to vector<5x8xf32>
    %109 = vector.extract_strided_slice %65 {offsets = [0, 16], sizes = [5, 8], strides = [1, 1]} : vector<5x32xf32> to vector<5x8xf32>
    %110 = vector.extract_strided_slice %70 {offsets = [0, 16], sizes = [5, 8], strides = [1, 1]} : vector<5x32xf32> to vector<5x8xf32>
    "tpu.trace_start"() <{level = 10 : i32, message = "qd,kd->qk"}> : () -> ()
    %cst_54 = arith.constant dense<0.000000e+00> : vector<5x5xf32>
    %111 = tpu.matmul %108, %109, %cst_54 {dimension_numbers = #tpu.dot_dimension_numbers<[1], [1], [0], [0], [0, 0, 1, 0], [], []>} : vector<5x8xf32>, vector<5x8xf32>, vector<5x5xf32> -> vector<5x5xf32>
    "tpu.trace_stop"() : () -> ()
    %cst_55 = arith.constant dense<0xFF800000> : vector<5xf32>
    %112 = vector.multi_reduction <maximumf>, %111, %cst_55 [1] : vector<5x5xf32> to vector<5xf32>
    %113 = vector.shape_cast %112 : vector<5xf32> to vector<5x1xf32>
    %114 = vector.broadcast %113 : vector<5x1xf32> to vector<5x5xf32>
    %115 = arith.subf %111, %114 : vector<5x5xf32>
    %116 = math.exp %115 : vector<5x5xf32>
    %cst_56 = arith.constant dense<0.000000e+00> : vector<5xf32>
    %117 = vector.multi_reduction <add>, %116, %cst_56 [1] : vector<5x5xf32> to vector<5xf32>
    %118 = vector.shape_cast %117 : vector<5xf32> to vector<5x1xf32>
    %119 = tpu.reciprocal %118 {approx = true} : vector<5x1xf32> -> vector<5x1xf32>
    %120 = vector.broadcast %119 : vector<5x1xf32> to vector<5x5xf32>
    %121 = arith.mulf %116, %120 : vector<5x5xf32>
    %cst_57 = arith.constant dense<0.000000e+00> : vector<5x8xf32>
    %122 = tpu.matmul %121, %110, %cst_57 {dimension_numbers = #tpu.dot_dimension_numbers<[1], [0], [0], [1], [0, 0, 1, 1], [], []>} : vector<5x5xf32>, vector<5x8xf32>, vector<5x8xf32> -> vector<5x8xf32>
    %c16 = arith.constant 16 : index
    %c0_58 = arith.constant 0 : index
    %123 = vector.load %arg14[%c16, %c0_58] : memref<32x32xf32, #tpu.memory_space<vmem>>, vector<8x32xf32>
    %cst_59 = arith.constant dense<0.000000e+00> : vector<5x32xf32>
    %124 = tpu.matmul %122, %123, %cst_59 {dimension_numbers = #tpu.dot_dimension_numbers<[1], [0], [0], [1], [0, 0, 1, 1], [], []>} : vector<5x8xf32>, vector<8x32xf32>, vector<5x32xf32> -> vector<5x32xf32>
    %125 = arith.addf %107, %124 : vector<5x32xf32>
    %126 = vector.extract_strided_slice %60 {offsets = [0, 24], sizes = [5, 8], strides = [1, 1]} : vector<5x32xf32> to vector<5x8xf32>
    %127 = vector.extract_strided_slice %65 {offsets = [0, 24], sizes = [5, 8], strides = [1, 1]} : vector<5x32xf32> to vector<5x8xf32>
    %128 = vector.extract_strided_slice %70 {offsets = [0, 24], sizes = [5, 8], strides = [1, 1]} : vector<5x32xf32> to vector<5x8xf32>
    "tpu.trace_start"() <{level = 10 : i32, message = "qd,kd->qk"}> : () -> ()
    %cst_60 = arith.constant dense<0.000000e+00> : vector<5x5xf32>
    %129 = tpu.matmul %126, %127, %cst_60 {dimension_numbers = #tpu.dot_dimension_numbers<[1], [1], [0], [0], [0, 0, 1, 0], [], []>} : vector<5x8xf32>, vector<5x8xf32>, vector<5x5xf32> -> vector<5x5xf32>
    "tpu.trace_stop"() : () -> ()
    %cst_61 = arith.constant dense<0xFF800000> : vector<5xf32>
    %130 = vector.multi_reduction <maximumf>, %129, %cst_61 [1] : vector<5x5xf32> to vector<5xf32>
    %131 = vector.shape_cast %130 : vector<5xf32> to vector<5x1xf32>
    %132 = vector.broadcast %131 : vector<5x1xf32> to vector<5x5xf32>
    %133 = arith.subf %129, %132 : vector<5x5xf32>
    %134 = math.exp %133 : vector<5x5xf32>
    %cst_62 = arith.constant dense<0.000000e+00> : vector<5xf32>
    %135 = vector.multi_reduction <add>, %134, %cst_62 [1] : vector<5x5xf32> to vector<5xf32>
    %136 = vector.shape_cast %135 : vector<5xf32> to vector<5x1xf32>
    %137 = tpu.reciprocal %136 {approx = true} : vector<5x1xf32> -> vector<5x1xf32>
    %138 = vector.broadcast %137 : vector<5x1xf32> to vector<5x5xf32>
    %139 = arith.mulf %134, %138 : vector<5x5xf32>
    %cst_63 = arith.constant dense<0.000000e+00> : vector<5x8xf32>
    %140 = tpu.matmul %139, %128, %cst_63 {dimension_numbers = #tpu.dot_dimension_numbers<[1], [0], [0], [1], [0, 0, 1, 1], [], []>} : vector<5x5xf32>, vector<5x8xf32>, vector<5x8xf32> -> vector<5x8xf32>
    %c24 = arith.constant 24 : index
    %c0_64 = arith.constant 0 : index
    %141 = vector.load %arg14[%c24, %c0_64] : memref<32x32xf32, #tpu.memory_space<vmem>>, vector<8x32xf32>
    %cst_65 = arith.constant dense<0.000000e+00> : vector<5x32xf32>
    %142 = tpu.matmul %140, %141, %cst_65 {dimension_numbers = #tpu.dot_dimension_numbers<[1], [0], [0], [1], [0, 0, 1, 1], [], []>} : vector<5x8xf32>, vector<8x32xf32>, vector<5x32xf32> -> vector<5x32xf32>
    %143 = arith.addf %125, %142 : vector<5x32xf32>
    %144 = arith.addf %29, %143 : vector<5x32xf32>
    %c0_66 = arith.constant 0 : index
    %c0_67 = arith.constant 0 : index
    %145 = vector.load %arg15[%c0_66, %c0_67] : memref<1x32xf32, #tpu.memory_space<vmem>>, vector<1x32xf32>
    %146 = vector.broadcast %145 : vector<1x32xf32> to vector<5x32xf32>
    %147 = arith.addf %144, %146 : vector<5x32xf32>
    %c0_68 = arith.constant 0 : index
    %c0_69 = arith.constant 0 : index
    %148 = vector.load %arg16[%c0_68, %c0_69] : memref<1x32xf32, #tpu.memory_space<vmem>>, vector<1x32xf32>
    %c0_70 = arith.constant 0 : index
    %c0_71 = arith.constant 0 : index
    %149 = vector.load %arg17[%c0_70, %c0_71] : memref<1x32xf32, #tpu.memory_space<vmem>>, vector<1x32xf32>
    %cst_72 = arith.constant dense<0.000000e+00> : vector<5xf32>
    %150 = vector.multi_reduction <add>, %147, %cst_72 [1] : vector<5x32xf32> to vector<5xf32>
    %151 = vector.shape_cast %150 : vector<5xf32> to vector<5x1xf32>
    %cst_73 = arith.constant 3.200000e+01 : f32
    %152 = vector.broadcast %cst_73 : f32 to vector<5x1xf32>
    %153 = arith.divf %151, %152 : vector<5x1xf32>
    %154 = vector.broadcast %153 : vector<5x1xf32> to vector<5x32xf32>
    %155 = arith.subf %147, %154 : vector<5x32xf32>
    %156 = arith.mulf %155, %155 : vector<5x32xf32>
    %cst_74 = arith.constant dense<0.000000e+00> : vector<5xf32>
    %157 = vector.multi_reduction <add>, %156, %cst_74 [1] : vector<5x32xf32> to vector<5xf32>
    %158 = vector.shape_cast %157 : vector<5xf32> to vector<5x1xf32>
    %cst_75 = arith.constant 3.200000e+01 : f32
    %159 = vector.broadcast %cst_75 : f32 to vector<5x1xf32>
    %160 = arith.divf %158, %159 : vector<5x1xf32>
    %161 = vector.broadcast %153 : vector<5x1xf32> to vector<5x32xf32>
    %162 = arith.subf %147, %161 : vector<5x32xf32>
    %cst_76 = arith.constant 9.99999974E-6 : f32
    %163 = vector.broadcast %cst_76 : f32 to vector<5x1xf32>
    %164 = arith.addf %160, %163 : vector<5x1xf32>
    %165 = math.rsqrt %164 : vector<5x1xf32>
    %166 = vector.broadcast %165 : vector<5x1xf32> to vector<5x32xf32>
    %167 = arith.mulf %162, %166 : vector<5x32xf32>
    %168 = vector.broadcast %148 : vector<1x32xf32> to vector<5x32xf32>
    %169 = arith.mulf %167, %168 : vector<5x32xf32>
    %170 = vector.broadcast %149 : vector<1x32xf32> to vector<5x32xf32>
    %171 = arith.addf %169, %170 : vector<5x32xf32>
    %c0_77 = arith.constant 0 : index
    %c0_78 = arith.constant 0 : index
    %172 = vector.load %arg18[%c0_77, %c0_78] : memref<32x128xf32, #tpu.memory_space<vmem>>, vector<32x128xf32>
    %cst_79 = arith.constant dense<0.000000e+00> : vector<5x128xf32>
    %173 = tpu.matmul %171, %172, %cst_79 {dimension_numbers = #tpu.dot_dimension_numbers<[1], [0], [0], [1], [0, 0, 1, 1], [], []>} : vector<5x32xf32>, vector<32x128xf32>, vector<5x128xf32> -> vector<5x128xf32>
    %c0_80 = arith.constant 0 : index
    %c0_81 = arith.constant 0 : index
    %174 = vector.load %arg19[%c0_80, %c0_81] : memref<1x128xf32, #tpu.memory_space<vmem>>, vector<1x128xf32>
    %175 = vector.broadcast %174 : vector<1x128xf32> to vector<5x128xf32>
    %176 = arith.addf %173, %175 : vector<5x128xf32>
    %cst_82 = arith.constant 1.702000e+00 : f32
    %177 = vector.broadcast %cst_82 : f32 to vector<5x128xf32>
    %178 = arith.mulf %177, %176 : vector<5x128xf32>
    %179 = arith.negf %178 : vector<5x128xf32>
    %180 = math.exp %179 : vector<5x128xf32>
    %cst_83 = arith.constant 1.000000e+00 : f32
    %181 = vector.broadcast %cst_83 : f32 to vector<5x128xf32>
    %182 = arith.addf %181, %180 : vector<5x128xf32>
    %183 = arith.divf %181, %182 : vector<5x128xf32>
    %184 = arith.mulf %176, %183 : vector<5x128xf32>
    %c0_84 = arith.constant 0 : index
    %c0_85 = arith.constant 0 : index
    %185 = vector.load %arg20[%c0_84, %c0_85] : memref<128x32xf32, #tpu.memory_space<vmem>>, vector<128x32xf32>
    %cst_86 = arith.constant dense<0.000000e+00> : vector<5x32xf32>
    %186 = tpu.matmul %184, %185, %cst_86 {dimension_numbers = #tpu.dot_dimension_numbers<[1], [0], [0], [1], [0, 0, 1, 1], [], []>} : vector<5x128xf32>, vector<128x32xf32>, vector<5x32xf32> -> vector<5x32xf32>
    %187 = arith.addf %147, %186 : vector<5x32xf32>
    %c0_87 = arith.constant 0 : index
    %c0_88 = arith.constant 0 : index
    %188 = vector.load %arg21[%c0_87, %c0_88] : memref<1x32xf32, #tpu.memory_space<vmem>>, vector<1x32xf32>
    %189 = vector.broadcast %188 : vector<1x32xf32> to vector<5x32xf32>
    %190 = arith.addf %187, %189 : vector<5x32xf32>
    %191 = vector.extract_strided_slice %190 {offsets = [0, 0], sizes = [1, 32], strides = [1, 1]} : vector<5x32xf32> to vector<1x32xf32>
    %c0_89 = arith.constant 0 : index
    %c0_90 = arith.constant 0 : index
    %192 = vector.load %arg22[%c0_89, %c0_90] : memref<1x32xf32, #tpu.memory_space<vmem>>, vector<1x32xf32>
    %c0_91 = arith.constant 0 : index
    %c0_92 = arith.constant 0 : index
    %193 = vector.load %arg23[%c0_91, %c0_92] : memref<1x32xf32, #tpu.memory_space<vmem>>, vector<1x32xf32>
    %cst_93 = arith.constant dense<0.000000e+00> : vector<1xf32>
    %194 = vector.multi_reduction <add>, %191, %cst_93 [1] : vector<1x32xf32> to vector<1xf32>
    %195 = vector.shape_cast %194 : vector<1xf32> to vector<1x1xf32>
    %cst_94 = arith.constant 3.200000e+01 : f32
    %196 = vector.broadcast %cst_94 : f32 to vector<1x1xf32>
    %197 = arith.divf %195, %196 : vector<1x1xf32>
    %198 = vector.broadcast %197 : vector<1x1xf32> to vector<1x32xf32>
    %199 = arith.subf %191, %198 : vector<1x32xf32>
    %200 = arith.mulf %199, %199 : vector<1x32xf32>
    %cst_95 = arith.constant dense<0.000000e+00> : vector<1xf32>
    %201 = vector.multi_reduction <add>, %200, %cst_95 [1] : vector<1x32xf32> to vector<1xf32>
    %202 = vector.shape_cast %201 : vector<1xf32> to vector<1x1xf32>
    %cst_96 = arith.constant 3.200000e+01 : f32
    %203 = vector.broadcast %cst_96 : f32 to vector<1x1xf32>
    %204 = arith.divf %202, %203 : vector<1x1xf32>
    %205 = vector.broadcast %197 : vector<1x1xf32> to vector<1x32xf32>
    %206 = arith.subf %191, %205 : vector<1x32xf32>
    %cst_97 = arith.constant 9.99999974E-6 : f32
    %207 = vector.broadcast %cst_97 : f32 to vector<1x1xf32>
    %208 = arith.addf %204, %207 : vector<1x1xf32>
    %209 = math.rsqrt %208 : vector<1x1xf32>
    %210 = vector.broadcast %209 : vector<1x1xf32> to vector<1x32xf32>
    %211 = arith.mulf %206, %210 : vector<1x32xf32>
    %212 = arith.mulf %211, %192 : vector<1x32xf32>
    %213 = arith.addf %212, %193 : vector<1x32xf32>
    %c0_98 = arith.constant 0 : index
    %c0_99 = arith.constant 0 : index
    %214 = vector.load %arg24[%c0_98, %c0_99] : memref<32x128xf32, #tpu.memory_space<vmem>>, vector<32x128xf32>
    %cst_100 = arith.constant dense<0.000000e+00> : vector<1x128xf32>
    %215 = tpu.matmul %213, %214, %cst_100 {dimension_numbers = #tpu.dot_dimension_numbers<[1], [0], [0], [1], [0, 0, 1, 1], [], []>} : vector<1x32xf32>, vector<32x128xf32>, vector<1x128xf32> -> vector<1x128xf32>
    %c0_101 = arith.constant 0 : index
    %c0_102 = arith.constant 0 : index
    %c0_103 = arith.constant 0 : index
    %216 = vector.load %arg25[%c0_101, %c0_102, %c0_103] : memref<1x1x128xf32, #tpu.memory_space<vmem>>, vector<1x1x128xf32>
    %217 = vector.shape_cast %216 : vector<1x1x128xf32> to vector<1x128xf32>
    %218 = vector.shape_cast %215 : vector<1x128xf32> to vector<1x1x128xf32>
    tpu.vector_store %arg25[%c0_101, %c0_102, %c0_103], %218 {strides = array<i32>} : memref<1x1x128xf32, #tpu.memory_space<vmem>>, vector<1x1x128xf32>,
    return
  }
  func.func @transform_0(%arg0: i32) -> (i32, i32, i32) {
    %c0_i32 = arith.constant 0 : i32
    %c0_i32_0 = arith.constant 0 : i32
    %c0_i32_1 = arith.constant 0 : i32
    return %arg0, %c0_i32, %c0_i32_0 : i32, i32, i32
  }
  func.func @transform_1(%arg0: i32) -> (i32, i32) {
    %c0_i32 = arith.constant 0 : i32
    %c0_i32_0 = arith.constant 0 : i32
    %c0_i32_1 = arith.constant 0 : i32
    return %c0_i32, %c0_i32_0 : i32, i32
  }
  func.func @transform_2(%arg0: i32) -> (i32, i32) {
    %c0_i32 = arith.constant 0 : i32
    %c0_i32_0 = arith.constant 0 : i32
    %c0_i32_1 = arith.constant 0 : i32
    return %c0_i32, %c0_i32_0 : i32, i32
  }
  func.func @transform_3(%arg0: i32) -> (i32, i32) {
    %c0_i32 = arith.constant 0 : i32
    %c0_i32_0 = arith.constant 0 : i32
    %c0_i32_1 = arith.constant 0 : i32
    return %c0_i32, %c0_i32_0 : i32, i32
  }
  func.func @transform_4(%arg0: i32) -> (i32, i32) {
    %c0_i32 = arith.constant 0 : i32
    %c0_i32_0 = arith.constant 0 : i32
    %c0_i32_1 = arith.constant 0 : i32
    return %c0_i32, %c0_i32_0 : i32, i32
  }
  func.func @transform_5(%arg0: i32) -> (i32, i32) {
    %c0_i32 = arith.constant 0 : i32
    %c0_i32_0 = arith.constant 0 : i32
    %c0_i32_1 = arith.constant 0 : i32
    return %c0_i32, %c0_i32_0 : i32, i32
  }
  func.func @transform_6(%arg0: i32) -> (i32, i32) {
    %c0_i32 = arith.constant 0 : i32
    %c0_i32_0 = arith.constant 0 : i32
    %c0_i32_1 = arith.constant 0 : i32
    return %c0_i32, %c0_i32_0 : i32, i32
  }
  func.func @transform_7(%arg0: i32) -> (i32, i32) {
    %c0_i32 = arith.constant 0 : i32
    %c0_i32_0 = arith.constant 0 : i32
    %c0_i32_1 = arith.constant 0 : i32
    return %c0_i32, %c0_i32_0 : i32, i32
  }
  func.func @transform_8(%arg0: i32) -> (i32, i32) {
    %c0_i32 = arith.constant 0 : i32
    %c0_i32_0 = arith.constant 0 : i32
    %c0_i32_1 = arith.constant 0 : i32
    return %c0_i32, %c0_i32_0 : i32, i32
  }
  func.func @transform_9(%arg0: i32) -> (i32, i32) {
    %c0_i32 = arith.constant 0 : i32
    %c0_i32_0 = arith.constant 0 : i32
    %c0_i32_1 = arith.constant 0 : i32
    return %c0_i32, %c0_i32_0 : i32, i32
  }
  func.func @transform_10(%arg0: i32) -> (i32, i32) {
    %c0_i32 = arith.constant 0 : i32
    %c0_i32_0 = arith.constant 0 : i32
    %c0_i32_1 = arith.constant 0 : i32
    return %c0_i32, %c0_i32_0 : i32, i32
  }
  func.func @transform_11(%arg0: i32) -> (i32, i32) {
    %c0_i32 = arith.constant 0 : i32
    %c0_i32_0 = arith.constant 0 : i32
    %c0_i32_1 = arith.constant 0 : i32
    return %c0_i32, %c0_i32_0 : i32, i32
  }
  func.func @transform_12(%arg0: i32) -> (i32, i32) {
    %c0_i32 = arith.constant 0 : i32
    %c0_i32_0 = arith.constant 0 : i32
    %c0_i32_1 = arith.constant 0 : i32
    return %c0_i32, %c0_i32_0 : i32, i32
  }
  func.func @transform_13(%arg0: i32) -> (i32, i32) {
    %c0_i32 = arith.constant 0 : i32
    %c0_i32_0 = arith.constant 0 : i32
    %c0_i32_1 = arith.constant 0 : i32
    return %c0_i32, %c0_i32_0 : i32, i32
  }
  func.func @transform_14(%arg0: i32) -> (i32, i32) {
    %c0_i32 = arith.constant 0 : i32
    %c0_i32_0 = arith.constant 0 : i32
    %c0_i32_1 = arith.constant 0 : i32
    return %c0_i32, %c0_i32_0 : i32, i32
  }
  func.func @transform_15(%arg0: i32) -> (i32, i32) {
    %c0_i32 = arith.constant 0 : i32
    %c0_i32_0 = arith.constant 0 : i32
    %c0_i32_1 = arith.constant 0 : i32
    return %c0_i32, %c0_i32_0 : i32, i32
  }
  func.func @transform_16(%arg0: i32) -> (i32, i32) {
    %c0_i32 = arith.constant 0 : i32
    %c0_i32_0 = arith.constant 0 : i32
    %c0_i32_1 = arith.constant 0 : i32
    return %c0_i32, %c0_i32_0 : i32, i32
  }
  func.func @transform_17(%arg0: i32) -> (i32, i32) {
    %c0_i32 = arith.constant 0 : i32
    %c0_i32_0 = arith.constant 0 : i32
    %c0_i32_1 = arith.constant 0 : i32
    return %c0_i32, %c0_i32_0 : i32, i32
  }
  func.func @transform_18(%arg0: i32) -> (i32, i32) {
    %c0_i32 = arith.constant 0 : i32
    %c0_i32_0 = arith.constant 0 : i32
    %c0_i32_1 = arith.constant 0 : i32
    return %c0_i32, %c0_i32_0 : i32, i32
  }
  func.func @transform_19(%arg0: i32) -> (i32, i32) {
    %c0_i32 = arith.constant 0 : i32
    %c0_i32_0 = arith.constant 0 : i32
    %c0_i32_1 = arith.constant 0 : i32
    return %c0_i32, %c0_i32_0 : i32, i32
  }
  func.func @transform_20(%arg0: i32) -> (i32, i32) {
    %c0_i32 = arith.constant 0 : i32
    %c0_i32_0 = arith.constant 0 : i32
    %c0_i32_1 = arith.constant 0 : i32
    return %c0_i32, %c0_i32_0 : i32, i32
  }
  func.func @transform_21(%arg0: i32) -> (i32, i32) {
    %c0_i32 = arith.constant 0 : i32
    %c0_i32_0 = arith.constant 0 : i32
    %c0_i32_1 = arith.constant 0 : i32
    return %c0_i32, %c0_i32_0 : i32, i32
  }
  func.func @transform_22(%arg0: i32) -> (i32, i32) {
    %c0_i32 = arith.constant 0 : i32
    %c0_i32_0 = arith.constant 0 : i32
    %c0_i32_1 = arith.constant 0 : i32
    return %c0_i32, %c0_i32_0 : i32, i32
  }
  func.func @transform_23(%arg0: i32) -> (i32, i32) {
    %c0_i32 = arith.constant 0 : i32
    %c0_i32_0 = arith.constant 0 : i32
    %c0_i32_1 = arith.constant 0 : i32
    return %c0_i32, %c0_i32_0 : i32, i32
  }
  func.func @transform_24(%arg0: i32) -> (i32, i32, i32) {
    %c0_i32 = arith.constant 0 : i32
    %c0_i32_0 = arith.constant 0 : i32
    %c0_i32_1 = arith.constant 0 : i32
    return %arg0, %c0_i32, %c0_i32_0 : i32, i32, i32
  }
}

</mosaic_0001>

<bundles_post_ra>
// kernel: clip_finetuner_forward.3
= control target key start
LH: loop header
LB: loop body
LE: loop exit
PB: predicated region body
PF: predicated region fallthrough
CT: control target
= control target key end

     0   :  { %v157_v2 = vmov 0.0|0.0   ;;  %vm158_vm0 = vmmov 0   ;;  %v159_v4 = vmov 0.0   ;;  %s205_s0 = inlined_call_operand.vmem [shape: f32[2,16], index: 0, kind: input, shape index: {}]   ;;  %s206_s1 = inlined_call_operand.vmem [shape: f32[16,128], index: 1, kind: input, shape index: {}]   ;;  %s207_s2 = inlined_call_operand.vmem [shape: f32[1,128], index: 2, kind: input, shape index: {}]   ;;  %s208_s3 = inlined_call_operand.hbm [shape: f32[2,128], index: 3, kind: output, shape index: {}]  }
   0x1   :  { %v16_v0 = vld [vmem:[%s206_s1] sm:$0xff]  ;;  %v17_v1 = vld [vmem:[%s206_s1 + $0x8] sm:$0xff]  ;;  %126 = vmatprep.subr.bf16.mxu0 %v157_v2  ;;  %123 = vmatprep.mubr.msk.f32.mxu0 %vm158_vm0, %v159_v4 }
   0x2   :  { %v127_v3 = vpack.c.bf16 %v17_v1, %v16_v0 }
   0x3   :  { %8 = vsyncpa [#allocation3], 0  ;;  %v15_v5 = vld [vmem:[%s205_s0] sm:$0x3]  ;;  %vm25_vm1 = vcmask 130048   ;;  %s160_s20 = smov [#allocation2]  }
   0x4   :  { %128 = vmatpush3.bf16.msra.mxu0 %v127_v3  ;;  %v114_v6 = vld [vmem:[%s207_s2] ss:$0 sm:$0xff]  ;;  %s106_s1 = sshll.u32 %s160_s20, 4  ;;  %s107_s1 = int_to_ptr.vmem [resolvable:$true] %s106_s1 }
   0x5   :  { %s133_s21 = scalar_lea.vmem %s107_s1, 32  ;;  %p138_p1 = scmp.lt.s32.totalorder %s107_s1, %s107_s1 }
   0x6   :  { %p134_p0 = scmp.ne.s32.totalorder %s107_s1, %s133_s21  ;;  %p139_p2 = scmp.lt.s32.totalorder %s133_s21, %s133_s21 }
   0x7   :  { %124 = vmatmul.mubr.msk.f32.vlgmr.msra.gmra.mrb[0].mxu0 %vm25_vm1, %v15_v5 }
   0x8   :  { %p140_p3 = por %p139_p2, %p138_p1 }
   0xa   :  { %p141_p4 = pnand %p140_p3, %p134_p0 }
  0xda   :  { %v95_v7 = vpop.f32.mrb[0].mxu0 }
  0xdb   :  { %v96_v8 = vadd.f32 %v114_v6, %v95_v7  ;;  %v125_v9 = vpop.f32.mrb[1].mxu0 }
  0xdd   :  { %99 = vst [vmem:[#allocation2] sm:$0x3] %v96_v8 }
  0xde   :  { %144 = shalt.err (!%p141_p4)
}
  0xdf   :  { %s145_s23 = scalar_lea.hbm %s208_s3, 32 }
  0xe0   :  { %p146_p5 = scmp.ne.s32.totalorder %s208_s3, %s145_s23  ;;  %p149_p6 = scmp.lt.u32.totalorder %s145_s23, %s208_s3 }
  0xe2   :  { %p151_p7 = pnand %p149_p6, %p146_p5 }
  0xe4   :  { %154 = shalt.err (!%p151_p7)
}
  0xe5   :  { %109 = dma.vmem_to_hbm [thread:$0]  %s107_s1, 32, %s208_s3, [#allocation3]  }
  0xe6   :  { %155 = dma.done.wait [#allocation3], 32  }
  0xe7   :  { %156 = vsyncadd [#allocation3], 4294967264 }
  0xe8   :  { %113 = vsyncpa [#allocation3], 1 }

// kernel: clip_finetuner_forward.2
= control target key start
LH: loop header
LB: loop body
LE: loop exit
PB: predicated region body
PF: predicated region fallthrough
CT: control target
= control target key end

     0   :  { %s3414_s0 = inlined_call_operand.vmem [shape: f32[2,5,192], index: 0, kind: input, shape index: {}]   ;;  %s3415_s1 = inlined_call_operand.vmem [shape: f32[192,32], index: 1, kind: input, shape index: {}]   ;;  %s3416_s2 = inlined_call_operand.vmem [shape: f32[5,32], index: 2, kind: input, shape index: {}]   ;;  %s3417_s3 = inlined_call_operand.vmem [shape: f32[1,32], index: 3, kind: input, shape index: {}]   ;;  %s3418_s4 = inlined_call_operand.vmem [shape: f32[1,32], index: 4, kind: input, shape index: {}]   ;;  %s3419_s5 = inlined_call_operand.vmem [shape: f32[1,32], index: 5, kind: input, shape index: {}]   ;;  %s3420_s6 = inlined_call_operand.vmem [shape: f32[1,32], index: 6, kind: input, shape index: {}]   ;;  %s3421_s7 = inlined_call_operand.vmem [shape: f32[32,32], index: 7, kind: input, shape index: {}]   ;;  %s3422_s8 = inlined_call_operand.vmem [shape: f32[32,32], index: 8, kind: input, shape index: {}]   ;;  %s3423_s9 = inlined_call_operand.vmem [shape: f32[32,32], index: 9, kind: input, shape index: {}]   ;;  %s3424_s10 = inlined_call_operand.vmem [shape: f32[1,32], index: 10, kind: input, shape index: {}]   ;;  %s3425_s11 = inlined_call_operand.vmem [shape: f32[1,32], index: 11, kind: input, shape index: {}]   ;;  %s3426_s12 = inlined_call_operand.vmem [shape: f32[1,32], index: 12, kind: input, shape index: {}]   ;;  %s3427_s13 = inlined_call_operand.vmem [shape: f32[32,32], index: 13, kind: input, shape index: {}]   ;;  %s3428_s14 = inlined_call_operand.vmem [shape: f32[1,32], index: 14, kind: input, shape index: {}]   ;;  %s3429_s15 = inlined_call_operand.vmem [shape: f32[1,32], index: 15, kind: input, shape index: {}]   ;;  %s3430_s16 = inlined_call_operand.vmem [shape: f32[1,32], index: 16, kind: input, shape index: {}]   ;;  %s3431_s17 = inlined_call_operand.vmem [shape: f32[32,128], index: 17, kind: input, shape index: {}]   ;;  %s3432_s18 = inlined_call_operand.vmem [shape: f32[1,128], index: 18, kind: input, shape index: {}]   ;;  %s3433_s19 = inlined_call_operand.vmem [shape: f32[128,32], index: 19, kind: input, shape index: {}]   ;;  %s3434_s20 = inlined_call_operand.vmem [shape: f32[1,32], index: 20, kind: input, shape index: {}]   ;;  %s3435_s21 = inlined_call_operand.vmem [shape: f32[1,32], index: 21, kind: input, shape index: {}]   ;;  %s3436_s22 = inlined_call_operand.vmem [shape: f32[1,32], index: 22, kind: input, shape index: {}]   ;;  %s3437_s23 = inlined_call_operand.vmem [shape: f32[32,128], index: 23, kind: input, shape index: {}]   ;;  %s3438_s24 = inlined_call_operand.vmem [shape: f32[2,1,128], index: 24, kind: output, shape index: {}]  }
   0x1   :  { %3443 = sst [smem:[#allocation2_spill]] %s3414_s0 }
   0x2   :  { %3444 = sst [smem:[#allocation3_spill]] %s3415_s1 }
   0x3   :  { %3445 = sst [smem:[#allocation4_spill]] %s3416_s2 }
   0x4   :  { %3446 = sst [smem:[#allocation5_spill]] %s3417_s3 }
   0x5   :  { %3447 = sst [smem:[#allocation6_spill]] %s3418_s4 }
   0x6   :  { %3448 = sst [smem:[#allocation7_spill]] %s3419_s5  ;;  %s3010_s5 = smov 0  }
   0x7   :  { %3449 = sst [smem:[#allocation8_spill]] %s3420_s6 }
   0x8   :  { %3450 = sst [smem:[#allocation9_spill]] %s3421_s7 }
   0x9   :  { %3451 = sst [smem:[#allocation10_spill]] %s3422_s8 }
   0xa LB: > { %s2474_s26 = sadd.s32 4294967295, %s2877_s5   ;;  %p2478_p0 = scmp.ge.s32.totalorder %s2877_s5, 1  ;;  %s2877_s5 = sphi %s3010_s5, %s34_s5  }
   0xb   : > { %p662_p1 = scmp.lt.s32.totalorder %s2877_s5, 3 }
   0xd   : > { %p663_p2 = pnand %p2478_p0, %p662_p1 }
   0xe   : > { %s3452_s6 = sld [smem:[#allocation3_spill]] (!%p663_p2)  ;;  %p726_p3 = scmp.lt.s32.totalorder (!%p663_p2), %s2474_s26, 1  ;;  %v2879_v3 = vmov (!%p663_p2), 0.0|0.0   ;;  %vm761_vm0 = vcmask (!%p663_p2), 523264   ;;  %vm837_vm1 = vcmask (!%p663_p2), 258048   ;;  %vm2880_vm2 = vmmov (!%p663_p2), 0  }
   0xf   : > { %666 = sbr.rel (%p663_p2) target bundleno = 4665 (0x1239), region = 116  ;;  %2739 = vmatprep.subr.bf16.mxu0 (!%p663_p2), %v2879_v3  ;;  %2781 = vmatprep.subr.bf16.mxu1 (!%p663_p2), %v2879_v3  ;;  %s3453_s29 = sld [smem:[#allocation2_spill]] (!%p663_p2)  ;;  %vm906_vm3 = vcmask (!%p663_p2), 261120   ;;  %vm1143_vm4 = vcmask (!%p663_p2), 64512   ;;  %vm1236_vm5 = vcmask (!%p663_p2), 1044480   ;;  %vm1220_vm6 = vcmask (!%p663_p2), 36864  }
  0x10   : > { %s3454_s4 = sld [smem:[#allocation4_spill]] (!%p663_p2)  ;;  %s3457_s3 = sld [smem:[#allocation10_spill]] (!%p663_p2)  ;;  %vm1232_vm7 = vcmask (!%p663_p2), 39936   ;;  %vm2333_vm8 = vcmask (!%p663_p2), 253952  }
  0x11   : > { %s3458_s1 = sld [smem:[#allocation9_spill]] (!%p663_p2)  ;;  %s3459_s2 = sld [smem:[#allocation7_spill]] (!%p663_p2) }
  0x14   : > { %v736_v0 = vld [vmem:[%s3452_s6] sm:$0xff] (!%p663_p2)  ;;  %v737_v1 = vld [vmem:[%s3452_s6 + $0x8] sm:$0xff] (!%p663_p2)  ;;  %v738_v2 = vld [vmem:[%s3452_s6 + $0x10] sm:$0xff] (!%p663_p2) }
  0x15   : > { %v2740_v4 = vpack.c.bf16 (!%p663_p2), %v737_v1, %v736_v0  ;;  %v739_v5 = vld [vmem:[%s3452_s6 + $0x18] sm:$0xff] (!%p663_p2)  ;;  %v740_v7 = vld [vmem:[%s3452_s6 + $0x20] sm:$0xff] (!%p663_p2)  ;;  %v741_v8 = vld [vmem:[%s3452_s6 + $0x28] sm:$0xff] (!%p663_p2) }
  0x16   : > { %s3462_s26 = smov (!%p726_p3, %s2474_s26), 1  ;;  %v2743_v6 = vpack.c.bf16 %v739_v5, %v738_v2  ;;  %v2746_v9 = vpack.c.bf16 %v741_v8, %v740_v7  ;;  %v742_v10 = vld [vmem:[%s3452_s6 + $0x30] sm:$0xff]  ;;  %v743_v11 = vld [vmem:[%s3452_s6 + $0x38] sm:$0xff]  ;;  %v744_v14 = vld [vmem:[%s3452_s6 + $0x40] sm:$0xff] }
  0x17   : > { %2741 = vmatpush1.bf16.msra.mxu0 %v2740_v4  ;;  %s2522_s27 = sshll.u32 %s3462_s26, 4  ;;  %v2749_v13 = vpack.c.bf16 %v743_v11, %v742_v10  ;;  %v745_v15 = vld [vmem:[%s3452_s6 + $0x48] sm:$0xff]  ;;  %v746_v17 = vld [vmem:[%s3452_s6 + $0x50] sm:$0xff]  ;;  %v747_v18 = vld [vmem:[%s3452_s6 + $0x58] sm:$0xff]  ;;  %s733_s25 = scalar_lea.vmem %s3438_s24, %s3462_s26 }
  0x18   : > { %2742 = vmatprep.subr.bf16.mxu0 %v2879_v3  ;;  %s3045_s0 = scalar_lea.vmem %s3453_s29, %s2522_s27  ;;  %v2752_v16 = vpack.c.bf16 %v745_v15, %v744_v14  ;;  %v2755_v19 = vpack.c.bf16 %v747_v18, %v746_v17  ;;  %v748_v20 = vld [vmem:[%s3452_s6 + $0x60] sm:$0xff]  ;;  %v749_v21 = vld [vmem:[%s3452_s6 + $0x68] sm:$0xff]  ;;  %v750_v23 = vld [vmem:[%s3452_s6 + $0x70] sm:$0xff]  ;;  %s3455_s27 = sld [smem:[#allocation5_spill]] }
  0x19   : > { %v735_v12 = vld [vmem:[%s3045_s0 + $0x8] sm:$0x1f]  ;;  %v2758_v22 = vpack.c.bf16 %v749_v21, %v748_v20  ;;  %v751_v24 = vld [vmem:[%s3452_s6 + $0x78] sm:$0xff]  ;;  %v752_v26 = vld [vmem:[%s3452_s6 + $0x80] sm:$0xff]  ;;  %s3456_s29 = sld [smem:[#allocation6_spill]] }
  0x1a   : > { %2481 = vmatprep.mubr.msk.f32.mxu0 %vm761_vm0, %v735_v12  ;;  %v2761_v25 = vpack.c.bf16 %v751_v24, %v750_v23  ;;  %v753_v27 = vld [vmem:[%s3452_s6 + $0x88] sm:$0xff]  ;;  %v754_v29 = vld [vmem:[%s3452_s6 + $0x90] sm:$0xff]  ;;  %v755_v30 = vld [vmem:[%s3452_s6 + $0x98] sm:$0xff] }
  0x1b   : > { %2744 = vmatpush1.bf16.msra.mxu0 %v2743_v6  ;;  %v2764_v28 = vpack.c.bf16 %v753_v27, %v752_v26  ;;  %v2767_v31 = vpack.c.bf16 %v755_v30, %v754_v29  ;;  %v756_v32 = vld [vmem:[%s3452_s6 + $0xa0] sm:$0xff]  ;;  %v757_v33 = vld [vmem:[%s3452_s6 + $0xa8] sm:$0xff]  ;;  %v758_v35 = vld [vmem:[%s3452_s6 + $0xb0] sm:$0xff] }
  0x1c   : > { %2745 = vmatprep.subr.bf16.mxu0 %v2879_v3  ;;  %v2770_v34 = vpack.c.bf16 %v757_v33, %v756_v32  ;;  %v759_v36 = vld [vmem:[%s3452_s6 + $0xb8] sm:$0xff]  ;;  %v734_v38 = vld [vmem:[%s3045_s0] sm:$0x1f]  ;;  %v982_v1 = vld [vmem:[%s3457_s3 + $0x8] sm:$0xff]  ;;  %s3460_s0 = sld [smem:[#allocation8_spill]] }
  0x1d   : > { %v2773_v37 = vpack.c.bf16 %v759_v36, %v758_v35  ;;  %v760_v39 = vld [vmem:[%s3454_s4] sm:$0x1f]  ;;  %v896_v5 = vld [vmem:[%s3458_s1 + $0x8] sm:$0xff]  ;;  %v983_v7 = vld [vmem:[%s3457_s3 + $0x10] sm:$0xff]  ;;  %s2882_s4 = smov 120  }
  0x1e   : > { %v2482_v53 = vld [vmem:[%s3455_s27] ss:$0 sm:$0xff]  ;;  %v984_v8 = vld [vmem:[%s3457_s3 + $0x18] sm:$0xff]  ;;  %v897_v10 = vld [vmem:[%s3458_s1 + $0x10] sm:$0xff]  ;;  %s2884_s27 = smov 104  }
  0x1f   : > { %2747 = vmatpush1.bf16.msra.mxu0 %v2746_v9  ;;  %v2483_v55 = vld [vmem:[%s3456_s29] ss:$0 sm:$0xff]  ;;  %v2785_v9 = vpack.c.bf16 %v984_v8, %v983_v7  ;;  %v898_v11 = vld [vmem:[%s3458_s1 + $0x18] sm:$0xff]  ;;  %v1063_v21 = vld [vmem:[%s3423_s9 + $0x8] sm:$0xff] }
  0x20   : > { %2748 = vmatprep.subr.bf16.mxu0 %v2879_v3  ;;  %v981_v0 = vld [vmem:[%s3457_s3] sm:$0xff]  ;;  %v2779_v12 = vpack.c.bf16 %v898_v11, %v897_v10  ;;  %v1064_v26 = vld [vmem:[%s3423_s9 + $0x10] sm:$0xff]  ;;  %v1065_v27 = vld [vmem:[%s3423_s9 + $0x18] sm:$0xff] }
  0x21   : > { %v2782_v2 = vpack.c.bf16 %v982_v1, %v981_v0  ;;  %v895_v4 = vld [vmem:[%s3458_s1] sm:$0xff] }
  0x22   : > { %v2776_v6 = vpack.c.bf16 %v896_v5, %v895_v4  ;;  %v2484_v18 = vld [vmem:[%s3459_s2] ss:$0 sm:$0xff] }
  0x23   : > { %2750 = vmatpush1.bf16.msra.mxu0 %v2749_v13  ;;  %2783 = vmatpush3.bf16.msra.mxu1 %v2782_v2  ;;  %v2881_v13 = vmov 0.0   ;;  %v1062_v20 = vld [vmem:[%s3423_s9] sm:$0xff] }
  0x24   : > { %2751 = vmatprep.subr.bf16.mxu0 %v2879_v3  ;;  %2784 = vmatprep.subr.bf16.mxu1 %v2879_v3  ;;  %v2788_v24 = vpack.c.bf16 %v1063_v21, %v1062_v20  ;;  %v2486_v29 = vld [vmem:[%s3424_s10] ss:$0 sm:$0xff] }
  0x25   : > { %2608 = vmatprep.mubr.msk.f32.mxu1 %vm2880_vm2, %v2881_v13  ;;  %v2488_v30 = vld [vmem:[%s3425_s11] ss:$0 sm:$0xff] }
  0x26   : > { %v1310_v20 = vld [vmem:[%s3427_s13] sm:$0xff] }
  0x27   : > { %2753 = vmatpush1.bf16.msra.mxu0 %v2752_v16  ;;  %2786 = vmatpush3.bf16.msra.mxu1 %v2785_v9 }
  0x28   : > { %2754 = vmatprep.subr.bf16.mxu0 %v2879_v3  ;;  %2787 = vmatprep.subr.bf16.mxu1 %v2879_v3 }
  0x2b   : > { %2756 = vmatpush1.bf16.msra.mxu0 %v2755_v19 }
  0x2c   : > { %2757 = vmatprep.subr.bf16.mxu0 %v2879_v3 }
  0x2f   : > { %2759 = vmatpush1.bf16.msra.mxu0 %v2758_v22  ;;  %v2485_v22 = vld [vmem:[%s3460_s0] ss:$0 sm:$0xff]  ;;  %s2883_s0 = smov 112  }
  0x30   : > { %2760 = vmatprep.subr.bf16.mxu0 %v2879_v3 }
  0x33   : > { %2762 = vmatpush1.bf16.msra.mxu0 %v2761_v25 }
  0x34   : > { %2763 = vmatprep.subr.bf16.mxu0 %v2879_v3 }
  0x37   : > { %2765 = vmatpush1.bf16.msra.mxu0 %v2764_v28  ;;  %v2791_v28 = vpack.c.bf16 %v1065_v27, %v1064_v26 }
  0x38   : > { %2766 = vmatprep.subr.bf16.mxu0 %v2879_v3 }
  0x3b   : > { %2768 = vmatpush1.bf16.msra.mxu0 %v2767_v31 }
  0x3c   : > { %2769 = vmatprep.subr.bf16.mxu0 %v2879_v3 }
  0x3f   : > { %2771 = vmatpush1.bf16.msra.mxu0 %v2770_v34 }
  0x40   : > { %2772 = vmatprep.subr.bf16.mxu0 %v2879_v3 }
  0x43   : > { %2774 = vmatpush1.bf16.msra.mxu0 %v2773_v37 }
  0x44   : > { %2775 = vmatprep.subr.bf16.mxu0 %v2879_v3 }
  0x46   : > { %830 = vmatmul.mubr.f32.vlgmr.msra.gmra.mrb[0].mxu0 %v734_v38  ;;  %v2490_v38 = vld [vmem:[%s3426_s12] ss:$0 sm:$0xff] }
  0x47   : > { %2777 = vmatpush3.bf16.msra.mxu0 %v2776_v6  ;;  %2597 = vmatprep.mubr.msk.f32.mxu0 %vm2880_vm2, %v2881_v13 }
  0x48   : > { %2778 = vmatprep.subr.bf16.mxu0 %v2879_v3 }
  0x4b   : > { %2780 = vmatpush3.bf16.msra.mxu0 %v2779_v12 }
  0x4c   : > { %2652 = vmatprep.subr.mxu0 %v2881_v13 }
 0x119   : > { %v831_v40 = vpop.f32.mrb[0].mxu0 }
 0x11a   : > { %v832_v41 = vadd.f32 %v831_v40, %v760_v39  ;;  %v833_v42 = vpop.f32.mrb[1].mxu0 }
 0x11c   : > { %v838_v43 = vsel %vm837_vm1, %v832_v41, 0.0 }
 0x11d   : > { %839 = vadd.xlane.f32.xlu0 %v838_v43 }
 0x1aa   : > { %v840_v44 = vpop.xlane.xlu0 %839 }
 0x1ab   : > { %v842_v45 = vmul.f32 0.03125, %v840_v44 }
 0x1ad   : > { %v843_v46 = vsub.f32 %v832_v41, %v842_v45 }
 0x1af   : > { %v844_v47 = vmul.f32 %v843_v46, %v843_v46 }
 0x1b1   : > { %v845_v48 = vsel %vm837_vm1, %v844_v47, 0.0 }
 0x1b2   : > { %846 = vadd.xlane.f32.xlu0 %v845_v48 }
 0x23f   : > { %v847_v49 = vpop.xlane.xlu0 %846 }
 0x240   : > { %v848_v50 = vmul.f32 0.03125, %v847_v49 }
 0x242   : > { %v849_v51 = vadd.f32 1e-05, %v848_v50 }
 0x244   : > { %2843 = vrsqrt.f32 %v849_v51 }
 0x24e   : > { %v2844_v52 = vpop.eup %2843 }
 0x24f   : > { %v851_v54 = vmul.f32 %v2844_v52, %v843_v46 }
 0x251   : > { %v858_v56 = vmul.f32 %v2482_v53, %v851_v54 }
 0x253   : > { %v3125_v57 = vadd.f32 %v2483_v55, %v858_v56 }
 0x255   : > { %v868_v58 = vsel %vm837_vm1, %v3125_v57, 0.0 }
 0x256   : > { %869 = vadd.xlane.f32.xlu1 %v868_v58 }
 0x2e3   : > { %v870_v59 = vpop.xlane.xlu1 %869 }
 0x2e4   : > { %v871_v60 = vmul.f32 0.03125, %v870_v59 }
 0x2e6   : > { %v872_v61 = vsub.f32 %v3125_v57, %v871_v60 }
 0x2e8   : > { %v873_v62 = vmul.f32 %v872_v61, %v872_v61 }
 0x2ea   : > { %v874_v63 = vsel %vm837_vm1, %v873_v62, 0.0 }
 0x2eb   : > { %875 = vadd.xlane.f32.xlu1 %v874_v63 }
 0x378   : > { %v876_v14 = vpop.xlane.xlu1 %875 }
 0x379   : > { %v877_v15 = vmul.f32 0.03125, %v876_v14 }
 0x37b   : > { %v878_v16 = vadd.f32 1e-05, %v877_v15 }
 0x37d   : > { %2845 = vrsqrt.f32 %v878_v16 }
 0x387   : > { %v2846_v17 = vpop.eup %2845 }
 0x388   : > { %v880_v19 = vmul.f32 %v2846_v17, %v872_v61 }
 0x38a   : > { %v887_v23 = vmul.f32 %v2484_v18, %v880_v19  ;;  %v1477_v18 = vld [vmem:[%s3427_s13 + $0x8] sm:$0xff] }
 0x38c   : > { %v894_v25 = vadd.f32 %v2485_v22, %v887_v23 }
 0x38e   : > { %2598 = vmatmul.mubr.msk.f32.vlgmr.msra.gmra.mrb[2].mxu0 %vm906_vm3, %v894_v25  ;;  %2609 = vmatmul.mubr.msk.f32.vlgmr.msra.gmra.mrb[0].mxu1 %vm906_vm3, %v894_v25 }
 0x38f   : > { %2789 = vmatpush3.bf16.msra.mxu1 %v2788_v24  ;;  %2619 = vmatprep.mubr.msk.f32.mxu1 %vm2880_vm2, %v2881_v13 }
 0x390   : > { %2790 = vmatprep.subr.bf16.mxu1 %v2879_v3  ;;  %2654 = vmatprep.mubr.msk.f32.mxu0 %vm2880_vm2, %v2881_v13 }
 0x393   : > { %2792 = vmatpush3.bf16.msra.mxu1 %v2791_v28  ;;  %v1790_v28 = vld [vmem:[%s3427_s13 + $0x10] sm:$0xff] }
 0x394   : > { %2622 = vmatprep.subr.mxu1 %v2881_v13 }
 0x396   : > { %2620 = vmatmul.mubr.msk.f32.vlgmr.msra.gmra.mrb[2].mxu1 %vm906_vm3, %v894_v25 }
 0x397   : > { %2624 = vmatprep.mubr.msk.f32.mxu1 %vm2880_vm2, %v2881_v13 }
 0x461   : > { %v976_v31 = vpop.f32.mrb[2].mxu0  ;;  %v1058_v32 = vpop.f32.mrb[0].mxu1 }
 0x462   : > { %v977_v33 = vadd.f32 %v2486_v29, %v976_v31  ;;  %v1059_v34 = vadd.f32 %v2488_v30, %v1058_v32  ;;  %v2599_v35 = vpop.f32.mrb[3].mxu0  ;;  %v2610_v36 = vpop.f32.mrb[1].mxu1 }
 0x464   : > { %v980_v37 = vmul.f32 0.35355338, %v977_v33  ;;  %2623 = vmatpush3.xpose.msk.msra.mxu1 %vm1143_vm4, %v1059_v34 }
 0x465   : > { %2627 = vmatprep.subr.mxu1 %v2881_v13 }
 0x467   : > { %2625 = vmatmul.mubr.msk.f32.vlgmr.msra.gmra.mrb[4].mxu1 %vm1143_vm4, %v980_v37 }
 0x468   : > { %2629 = vmatprep.mubr.msk.f32.mxu1 %vm2880_vm2, %v2881_v13 }
 0x469   : > { %v1139_v39 = vpop.f32.mrb[2].mxu1 }
 0x46a   : > { %v3206_v40 = vadd.f32 %v2490_v38, %v1139_v39  ;;  %v2621_v41 = vpop.f32.mrb[3].mxu1 }
 0x46c   : > { %2628 = vmatpush3.msk.msra.mxu1 %vm1236_vm5, %v3206_v40 }
 0x46d   : > { %2632 = vmatprep.subr.mxu1 %v2881_v13 }
 0x53a   : > { %v1216_v42 = vpop.f32.mrb[4].mxu1 }
 0x53b   : > { %v2626_v43 = vpop.f32.mrb[5].mxu1  ;;  %v1221_v44 = vsel %vm1220_vm6, %v1216_v42, -inf }
 0x53c   : > { %1222 = vmax.xlane.f32.xlu0 %v1221_v44 }
 0x552   : > { %1313 = vrot.lane.b32.xlu0 %v1059_v34, %s2882_s4 }
 0x5c9   : > { %v1223_v45 = vpop.xlane.xlu0 %1222 }
 0x5ca   : > { %v1224_v46 = vsub.f32 %v1216_v42, %v1223_v45 }
 0x5cc   : > { %v1225_v47 = vmul.f32 1.442695, %v1224_v46  ;;  %v2031_v46 = vld [vmem:[%s3427_s13 + $0x18] sm:$0xff] }
 0x5cd   : > { %v1314_v56 = vpop.permute.xlu0 %1313 }
 0x5ce   : > { %2847 = vpow2.f32 %v1225_v47 }
 0x5d8   : > { %v2848_v48 = vpop.eup %2847 }
 0x5d9   : > { %v1227_v49 = vsel %vm1220_vm6, %v2848_v48, 0.0 }
 0x5da   : > { %1228 = vadd.xlane.f32.xlu1 %v1227_v49 }
 0x5eb   : > { %1311 = vrot.lane.b32.xlu1 %v980_v37, %s2882_s4 }
 0x5ef   : > { %1626 = vrot.lane.b32.xlu1 %v1059_v34, %s2883_s0 }
 0x5f3   : > { %1624 = vrot.lane.b32.xlu1 %v980_v37, %s2883_s0 }
 0x667   : > { %v1229_v50 = vpop.xlane.xlu1 %1228 }
 0x668   : > { %2849 = vrcp.f32 %v1229_v50 }
 0x66b   : > { %v1312_v51 = vpop.permute.xlu1 %1311 }
 0x66f   : > { %v1627_v52 = vpop.permute.xlu1 %1626 }
 0x670   : > { %2653 = vmatpush3.xpose.msk.msra.mxu0 %vm1143_vm4, %v1627_v52 }
 0x671   : > { %2662 = vmatprep.subr.mxu0 %v2881_v13 }
 0x672   : > { %v2850_v53 = vpop.eup %2849 }
 0x673   : > { %v1231_v54 = vmul.f32 %v2850_v53, %v2848_v48  ;;  %v1625_v55 = vpop.permute.xlu1 %1624 }
 0x674   : > { %2655 = vmatmul.mubr.msk.f32.vlgmr.msra.gmra.mrb[4].mxu0 %vm1143_vm4, %v1625_v55 }
 0x675   : > { %2630 = vmatmul.mubr.msk.f32.vlgmr.msra.gmra.mrb[6].mxu1 %vm1232_vm7, %v1231_v54  ;;  %2664 = vmatprep.mubr.msk.f32.mxu0 %vm2880_vm2, %v2881_v13 }
 0x676   : > { %2633 = vmatpush3.xpose.msk.msra.mxu1 %vm1143_vm4, %v1314_v56  ;;  %2634 = vmatprep.mubr.msk.f32.mxu1 %vm2880_vm2, %v2881_v13 }
 0x677   : > { %2637 = vmatprep.subr.mxu1 %v2881_v13  ;;  %2663 = vmatpush3.msra.mxu0 %v1790_v28  ;;  %v2243_v28 = vld [vmem:[%s3433_s19 + $0x38] sm:$0xff] }
 0x678   : > { %2672 = vmatprep.subr.mxu0 %v2881_v13 }
 0x679   : > { %2635 = vmatmul.mubr.msk.f32.vlgmr.msra.gmra.mrb[8].mxu1 %vm1143_vm4, %v1312_v51 }
 0x67a   : > { %2639 = vmatprep.mubr.msk.f32.mxu1 %vm2880_vm2, %v2881_v13 }
 0x747   : > { %v1698_v58 = vpop.f32.mrb[4].mxu0 }
 0x748   : > { %v1306_v59 = vpop.f32.mrb[6].mxu1  ;;  %v2656_v60 = vpop.f32.mrb[5].mxu0  ;;  %v1702_v8 = vsel %vm1220_vm6, %v1698_v58, -inf }
 0x749   : > { %v2631_v61 = vpop.f32.mrb[7].mxu1 }
 0x74c   : > { %v1385_v62 = vpop.f32.mrb[8].mxu1 }
 0x74d   : > { %v2636_v63 = vpop.f32.mrb[9].mxu1  ;;  %v1389_v0 = vsel %vm1220_vm6, %v1385_v62, -inf }
 0x74e   : > { %1390 = vmax.xlane.f32.xlu0 %v1389_v0 }
 0x764   : > { %1400 = vrot.lane.b32.xlu0 %v3206_v40, %s2882_s4 }
 0x768   : > { %1867 = vrot.lane.b32.xlu0 %v1059_v34, %s2884_s27 }
 0x76c   : > { %1865 = vrot.lane.b32.xlu0 %v980_v37, %s2884_s27 }
 0x7db   : > { %v1391_v1 = vpop.xlane.xlu0 %1390 }
 0x7dc   : > { %v1392_v2 = vsub.f32 %v1385_v62, %v1391_v1 }
 0x7de   : > { %v1393_v4 = vmul.f32 1.442695, %v1392_v2 }
 0x7df   : > { %v1401_v5 = vpop.permute.xlu0 %1400 }
 0x7e0   : > { %2851 = vpow2.f32 %v1393_v4  ;;  %2638 = vmatpush3.msk.msra.mxu1 %vm1236_vm5, %v1401_v5  ;;  %v2144_v4 = vld [vmem:[%s3431_s17] sm:$0xff] }
 0x7e1   : > { %2642 = vmatprep.subr.mxu1 %v2881_v13 }
 0x7e3   : > { %v1868_v26 = vpop.permute.xlu0 %1867 }
 0x7e7   : > { %v1866_v27 = vpop.permute.xlu0 %1865 }
 0x7ea   : > { %v2852_v6 = vpop.eup %2851 }
 0x7eb   : > { %v1395_v7 = vsel %vm1220_vm6, %v2852_v6, 0.0 }
 0x7ec   : > { %1396 = vadd.xlane.f32.xlu1 %v1395_v7  ;;  %v2147_v7 = vld [vmem:[%s3431_s17 + $0x18] sm:$0xff] }
 0x7f0   : > { %1703 = vmax.xlane.f32.xlu1 %v1702_v8 }
 0x879   : > { %v1397_v9 = vpop.xlane.xlu1 %1396 }
 0x87a   : > { %2853 = vrcp.f32 %v1397_v9 }
 0x87d   : > { %v1704_v10 = vpop.xlane.xlu1 %1703 }
 0x87e   : > { %v1705_v11 = vsub.f32 %v1698_v58, %v1704_v10  ;;  %v2512_v58 = vld [vmem:[%s3428_s14] ss:$0 sm:$0xff] }
 0x880   : > { %v1706_v12 = vmul.f32 1.442695, %v1705_v11 }
 0x882   : > { %2855 = vpow2.f32 %v1706_v12 }
 0x884   : > { %v2854_v14 = vpop.eup %2853 }
 0x885   : > { %v1399_v15 = vmul.f32 %v2854_v14, %v2852_v6  ;;  %v2146_v6 = vld [vmem:[%s3431_s17 + $0x10] sm:$0xff]  ;;  %v2513_v14 = vld [vmem:[%s3429_s15] ss:$0 sm:$0xff] }
 0x886   : > { %v2797_v8 = vpack.c.bf16 %v2147_v7, %v2146_v6 }
 0x887   : > { %2640 = vmatmul.mubr.msk.f32.vlgmr.msra.gmra.mrb[10].mxu1 %vm1232_vm7, %v1399_v15 }
 0x888   : > { %2644 = vmatprep.mubr.msk.f32.mxu1 %vm2880_vm2, %v2881_v13  ;;  %2643 = vmatpush3.msra.mxu1 %v1477_v18 }
 0x889   : > { %2647 = vmatprep.subr.mxu1 %v2881_v13 }
 0x88c   : > { %v2856_v16 = vpop.eup %2855 }
 0x88d   : > { %v1708_v17 = vsel %vm1220_vm6, %v2856_v16, 0.0 }
 0x88e   : > { %1709 = vadd.xlane.f32.xlu1 %v1708_v17 }
 0x89f   : > { %1713 = vrot.lane.b32.xlu1 %v3206_v40, %s2883_s0 }
 0x91b   : > { %v1710_v19 = vpop.xlane.xlu1 %1709 }
 0x91c   : > { %2857 = vrcp.f32 %v1710_v19  ;;  %v2236_v19 = vld [vmem:[%s3433_s19] sm:$0xff] }
 0x91f   : > { %v1714_v24 = vpop.permute.xlu1 %1713 }
 0x926   : > { %v2858_v23 = vpop.eup %2857 }
 0x927   : > { %v1712_v25 = vmul.f32 %v2858_v23, %v2856_v16  ;;  %v2514_v16 = vld [vmem:[%s3430_s16] ss:$0 sm:$0xff] }
 0x95a   : > { %v1473_v21 = vpop.f32.mrb[10].mxu1 }
 0x95b   : > { %v2641_v22 = vpop.f32.mrb[11].mxu1  ;;  %2645 = vmatmul.mubr.msk.f32.vlgmr.msra.gmra.mrb[12].mxu1 %vm1143_vm4, %v1473_v21 }
 0x95c   : > { %2648 = vmatpush3.msra.mxu1 %v1310_v20  ;;  %2649 = vmatprep.mubr.msk.f32.mxu1 %vm2880_vm2, %v2881_v13  ;;  %v2237_v20 = vld [vmem:[%s3433_s19 + $0x8] sm:$0xff]  ;;  %v2238_v22 = vld [vmem:[%s3433_s19 + $0x10] sm:$0xff] }
 0x95d   : > { %2657 = vmatprep.subr.mxu1 %v2881_v13  ;;  %v2800_v21 = vpack.c.bf16 %v2237_v20, %v2236_v19 }
 0x95f   : > { %2650 = vmatmul.mubr.msk.f32.vlgmr.msra.gmra.mrb[14].mxu1 %vm1143_vm4, %v1306_v59 }
 0x960   : > { %2658 = vmatpush3.msk.msra.mxu1 %vm1236_vm5, %v1714_v24  ;;  %2659 = vmatprep.mubr.msk.f32.mxu1 %vm2880_vm2, %v2881_v13  ;;  %v2240_v24 = vld [vmem:[%s3433_s19 + $0x20] sm:$0xff] }
 0x961   : > { %2667 = vmatprep.subr.mxu1 %v2881_v13 }
 0x963   : > { %2660 = vmatmul.mubr.msk.f32.vlgmr.msra.gmra.mrb[16].mxu1 %vm1232_vm7, %v1712_v25  ;;  %v2241_v25 = vld [vmem:[%s3433_s19 + $0x28] sm:$0xff] }
 0x964   : > { %2669 = vmatprep.mubr.msk.f32.mxu1 %vm2880_vm2, %v2881_v13 }
 0x967   : > { %2668 = vmatpush3.xpose.msk.msra.mxu1 %vm1143_vm4, %v1868_v26  ;;  %v2806_v26 = vpack.c.bf16 %v2241_v25, %v2240_v24 }
 0x968   : > { %2677 = vmatprep.subr.mxu1 %v2881_v13 }
 0x96a   : > { %2670 = vmatmul.mubr.msk.f32.vlgmr.msra.gmra.mrb[18].mxu1 %vm1143_vm4, %v1866_v27  ;;  %v2242_v27 = vld [vmem:[%s3433_s19 + $0x30] sm:$0xff] }
 0x96b   : > { %2679 = vmatprep.mubr.msk.f32.mxu1 %vm2880_vm2, %v2881_v13  ;;  %2678 = vmatpush3.msra.mxu1 %v2031_v46 }
 0x96c   : > { %2799 = vmatprep.subr.bf16.mxu1 %v2879_v3 }
 0xa2e   : > { %v1547_v29 = vpop.f32.mrb[12].mxu1 }
 0xa2f   : > { %v2646_v30 = vpop.f32.mrb[13].mxu1 }
 0xa30   : > { %v2244_v30 = vld [vmem:[%s3433_s19 + $0x40] sm:$0xff] }
 0xa32   : > { %v1620_v31 = vpop.f32.mrb[14].mxu1 }
 0xa33   : > { %v1621_v32 = vadd.f32 %v1620_v31, %v1547_v29  ;;  %v2651_v33 = vpop.f32.mrb[15].mxu1  ;;  %v2809_v29 = vpack.c.bf16 %v2243_v28, %v2242_v27  ;;  %v2245_v31 = vld [vmem:[%s3433_s19 + $0x48] sm:$0xff] }
 0xa34   : > { %v2246_v33 = vld [vmem:[%s3433_s19 + $0x50] sm:$0xff] }
 0xa36   : > { %v1786_v34 = vpop.f32.mrb[16].mxu1 }
 0xa37   : > { %v2661_v35 = vpop.f32.mrb[17].mxu1  ;;  %2665 = vmatmul.mubr.msk.f32.vlgmr.msra.gmra.mrb[6].mxu0 %vm1143_vm4, %v1786_v34  ;;  %v2247_v34 = vld [vmem:[%s3433_s19 + $0x58] sm:$0xff] }
 0xa38   : > { %2674 = vmatprep.mubr.msk.f32.mxu0 %vm2880_vm2, %v2881_v13  ;;  %v2815_v35 = vpack.c.bf16 %v2247_v34, %v2246_v33 }
 0xa3d   : > { %v1939_v36 = vpop.f32.mrb[18].mxu1 }
 0xa3e   : > { %v2671_v37 = vpop.f32.mrb[19].mxu1  ;;  %v1943_v38 = vsel %vm1220_vm6, %v1939_v36, -inf }
 0xa3f   : > { %1944 = vmax.xlane.f32.xlu0 %v1943_v38  ;;  %v2249_v37 = vld [vmem:[%s3433_s19 + $0x68] sm:$0xff] }
 0xa55   : > { %1954 = vrot.lane.b32.xlu0 %v3206_v40, %s2884_s27 }
 0xacc   : > { %v1945_v39 = vpop.xlane.xlu0 %1944 }
 0xacd   : > { %v1946_v41 = vsub.f32 %v1939_v36, %v1945_v39  ;;  %v2248_v36 = vld [vmem:[%s3433_s19 + $0x60] sm:$0xff]  ;;  %v2250_v39 = vld [vmem:[%s3433_s19 + $0x70] sm:$0xff] }
 0xace   : > { %v2818_v38 = vpack.c.bf16 %v2249_v37, %v2248_v36 }
 0xacf   : > { %v1947_v42 = vmul.f32 1.442695, %v1946_v41  ;;  %v2251_v41 = vld [vmem:[%s3433_s19 + $0x78] sm:$0xff] }
 0xad0   : > { %v1955_v43 = vpop.permute.xlu0 %1954 }
 0xad1   : > { %2859 = vpow2.f32 %v1947_v42  ;;  %2673 = vmatpush3.msk.msra.mxu0 %vm1236_vm5, %v1955_v43  ;;  %v2821_v42 = vpack.c.bf16 %v2251_v41, %v2250_v39  ;;  %v2515_v43 = vld [vmem:[%s3432_s18] ss:$0 sm:$0xff] }
 0xad2   : > { %2793 = vmatprep.subr.bf16.mxu0 %v2879_v3 }
 0xadb   : > { %v2860_v44 = vpop.eup %2859 }
 0xadc   : > { %v1949_v45 = vsel %vm1220_vm6, %v2860_v44, 0.0 }
 0xadd   : > { %1950 = vadd.xlane.f32.xlu1 %v1949_v45 }
 0xb0a   : > { %v1860_v40 = vpop.f32.mrb[6].mxu0 }
 0xb0b   : > { %v1864_v47 = vadd.f32 %v1860_v40, %v1621_v32  ;;  %v2666_v48 = vpop.f32.mrb[7].mxu0  ;;  %v2812_v32 = vpack.c.bf16 %v2245_v31, %v2244_v30 }
 0xb6a   : > { %v1951_v49 = vpop.xlane.xlu1 %1950 }
 0xb6b   : > { %2861 = vrcp.f32 %v1951_v49 }
 0xb75   : > { %v2862_v50 = vpop.eup %2861 }
 0xb76   : > { %v1953_v51 = vmul.f32 %v2862_v50, %v2860_v44 }
 0xb78   : > { %2675 = vmatmul.mubr.msk.f32.vlgmr.msra.gmra.mrb[8].mxu0 %vm1232_vm7, %v1953_v51 }
 0xb79   : > { %2690 = vmatprep.mubr.msk.f32.mxu0 %vm2880_vm2, %v2881_v13 }
 0xc4b   : > { %v2027_v52 = vpop.f32.mrb[8].mxu0 }
 0xc4c   : > { %v2676_v53 = vpop.f32.mrb[9].mxu0  ;;  %2680 = vmatmul.mubr.msk.f32.vlgmr.msra.gmra.mrb[20].mxu1 %vm1143_vm4, %v2027_v52 }
 0xc4d   : > { %2725 = vmatprep.mubr.msk.f32.mxu1 %vm2880_vm2, %v2881_v13  ;;  %2801 = vmatpush3.bf16.msra.mxu1 %v2800_v21  ;;  %v2518_v53 = vld [vmem:[%s3434_s20] ss:$0 sm:$0xff] }
 0xc4e   : > { %2802 = vmatprep.subr.bf16.mxu1 %v2879_v3 }
 0xd1f   : > { %v2101_v54 = vpop.f32.mrb[20].mxu1 }
 0xd20   : > { %v2105_v55 = vadd.f32 %v2101_v54, %v1864_v47  ;;  %v2681_v56 = vpop.f32.mrb[21].mxu1 }
 0xd22   : > { %v2106_v59 = vadd.f32 %v2105_v55, %v3125_v57  ;;  %v2145_v57 = vld [vmem:[%s3431_s17 + $0x8] sm:$0xff] }
 0xd23   : > { %v2794_v5 = vpack.c.bf16 %v2145_v57, %v2144_v4  ;;  %v2351_v4 = vld [vmem:[%s3437_s23 + $0x10] sm:$0xff]  ;;  %v2352_v57 = vld [vmem:[%s3437_s23 + $0x18] sm:$0xff] }
 0xd24   : > { %v3296_v60 = vadd.f32 %v2512_v58, %v2106_v59 }
 0xd25   : > { %2795 = vmatpush3.bf16.msra.mxu0 %v2794_v5  ;;  %v2827_v5 = vpack.c.bf16 %v2352_v57, %v2351_v4 }
 0xd26   : > { %v2117_v61 = vsel %vm837_vm1, %v3296_v60, 0.0  ;;  %2796 = vmatprep.subr.bf16.mxu0 %v2879_v3 }
 0xd27   : > { %2118 = vadd.xlane.f32.xlu1 %v2117_v61 }
 0xd29   : > { %2798 = vmatpush3.bf16.msra.mxu0 %v2797_v8 }
 0xd2a   : > { %2823 = vmatprep.subr.bf16.mxu0 %v2879_v3 }
 0xdb4   : > { %v2119_v62 = vpop.xlane.xlu1 %2118 }
 0xdb5   : > { %v2120_v63 = vmul.f32 0.03125, %v2119_v62 }
 0xdb7   : > { %v2121_v0 = vsub.f32 %v3296_v60, %v2120_v63 }
 0xdb9   : > { %v2122_v1 = vmul.f32 %v2121_v0, %v2121_v0 }
 0xdbb   : > { %v2123_v2 = vsel %vm837_vm1, %v2122_v1, 0.0  ;;  %v2349_v1 = vld [vmem:[%s3437_s23] sm:$0xff] }
 0xdbc   : > { %2124 = vadd.xlane.f32.xlu1 %v2123_v2  ;;  %v2350_v2 = vld [vmem:[%s3437_s23 + $0x8] sm:$0xff] }
 0xe49   : > { %v2125_v9 = vpop.xlane.xlu1 %2124 }
 0xe4a   : > { %v2126_v10 = vmul.f32 0.03125, %v2125_v9 }
 0xe4c   : > { %v2127_v11 = vadd.f32 1e-05, %v2126_v10 }
 0xe4e   : > { %2863 = vrsqrt.f32 %v2127_v11  ;;  %v2332_v11 = vld [vmem:[%s3436_s22] sm:$0x1] }
 0xe58   : > { %v2864_v12 = vpop.eup %2863 }
 0xe59   : > { %v2129_v15 = vmul.f32 %v2864_v12, %v2121_v0 }
 0xe5b   : > { %v2136_v17 = vmul.f32 %v2513_v14, %v2129_v15 }
 0xe5d   : > { %v2143_v18 = vadd.f32 %v2514_v16, %v2136_v17 }
 0xe5f   : > { %2691 = vmatmul.mubr.msk.f32.vlgmr.msra.gmra.mrb[10].mxu0 %vm906_vm3, %v2143_v18 }
 0xe60   : > { %2736 = vmatprep.mubr.msk.f32.mxu0 %vm2880_vm2, %v2881_v13  ;;  %v2239_v13 = vld [vmem:[%s3433_s19 + $0x18] sm:$0xff] }
 0xe61   : > { %v2803_v23 = vpack.c.bf16 %v2239_v13, %v2238_v22 }
 0xe63   : > { %2804 = vmatpush3.bf16.msra.mxu1 %v2803_v23 }
 0xe64   : > { %2805 = vmatprep.subr.bf16.mxu1 %v2879_v3 }
 0xe67   : > { %2807 = vmatpush3.bf16.msra.mxu1 %v2806_v26 }
 0xe68   : > { %2808 = vmatprep.subr.bf16.mxu1 %v2879_v3 }
 0xe6b   : > { %2810 = vmatpush3.bf16.msra.mxu1 %v2809_v29 }
 0xe6c   : > { %2811 = vmatprep.subr.bf16.mxu1 %v2879_v3 }
 0xe6f   : > { %2813 = vmatpush3.bf16.msra.mxu1 %v2812_v32 }
 0xe70   : > { %2814 = vmatprep.subr.bf16.mxu1 %v2879_v3 }
 0xe73   : > { %2816 = vmatpush3.bf16.msra.mxu1 %v2815_v35 }
 0xe74   : > { %2817 = vmatprep.subr.bf16.mxu1 %v2879_v3 }
 0xe77   : > { %2819 = vmatpush3.bf16.msra.mxu1 %v2818_v38 }
 0xe78   : > { %2820 = vmatprep.subr.bf16.mxu1 %v2879_v3 }
 0xe7b   : > { %2822 = vmatpush3.bf16.msra.mxu1 %v2821_v42 }
 0xf32   : > { %v2224_v44 = vpop.f32.mrb[10].mxu0 }
 0xf33   : > { %v2225_v45 = vadd.f32 %v2515_v43, %v2224_v44  ;;  %v2692_v46 = vpop.f32.mrb[11].mxu0 }
 0xf35   : > { %v2517_v40 = vmul.f32 -1.702, %v2225_v45 }
 0xf37   : > { %v2230_v47 = vmul.f32 1.442695, %v2517_v40 }
 0xf39   : > { %2865 = vpow2.f32 %v2230_v47 }
 0xf43   : > { %v2866_v48 = vpop.eup %2865 }
 0xf44   : > { %v2232_v49 = vadd.f32 1.0, %v2866_v48 }
 0xf46   : > { %2867 = vrcp.f32 %v2232_v49 }
 0xf50   : > { %v2868_v50 = vpop.eup %2867 }
 0xf51   : > { %v2235_v51 = vmul.f32 %v2868_v50, %v2225_v45 }
 0xf53   : > { %2726 = vmatmul.mubr.f32.vlgmr.msra.gmra.mrb[22].mxu1 %v2235_v51 }
0x1026   : > { %v2318_v52 = vpop.f32.mrb[22].mxu1 }
0x1027   : > { %v2322_v54 = vadd.f32 %v2318_v52, %v3296_v60  ;;  %v2727_v55 = vpop.f32.mrb[23].mxu1  ;;  %v2824_v60 = vpack.c.bf16 %v2350_v2, %v2349_v1 }
0x1029   : > { %v2330_v56 = vadd.f32 %v2518_v53, %v2322_v54  ;;  %2825 = vmatpush3.bf16.msra.mxu0 %v2824_v60 }
0x102a   : > { %2826 = vmatprep.subr.bf16.mxu0 %v2879_v3  ;;  %v2331_v3 = vld [vmem:[%s3435_s21] sm:$0x1] }
0x102b   : > { %v2334_v58 = vsel %vm2333_vm8, %v2330_v56, 0.0 }
0x102c   : > { %2335 = vadd.xlane.f32.xlu1 %v2334_v58 }
0x102d   : > { %2828 = vmatpush3.bf16.msra.mxu0 %v2827_v5 }
0x10b9   : > { %v2336_v59 = vpop.xlane.xlu1 %2335 }
0x10ba   : > { %v2337_v61 = vmul.f32 0.03125, %v2336_v59 }
0x10bc   : > { %v2338_v62 = vsub.f32 %v2330_v56, %v2337_v61 }
0x10be   : > { %v2339_v63 = vmul.f32 %v2338_v62, %v2338_v62 }
0x10c0   : > { %v2340_v0 = vsel %vm2333_vm8, %v2339_v63, 0.0 }
0x10c1   : > { %2341 = vadd.xlane.f32.xlu1 %v2340_v0 }
0x114e   : > { %v2342_v6 = vpop.xlane.xlu1 %2341 }
0x114f   : > { %v2343_v7 = vmul.f32 0.03125, %v2342_v6 }
0x1151   : > { %v2344_v8 = vadd.f32 1e-05, %v2343_v7 }
0x1153   : > { %2869 = vrsqrt.f32 %v2344_v8 }
0x115d   : > { %v2870_v9 = vpop.eup %2869 }
0x115e   : > { %v2346_v10 = vmul.f32 %v2870_v9, %v2338_v62 }
0x1160   : > { %v2347_v12 = vmul.f32 %v2346_v10, %v2331_v3 }
0x1162   : > { %v2348_v14 = vadd.f32 %v2347_v12, %v2332_v11 }
0x1164   : > { %2737 = vmatmul.mubr.msk.f32.vlgmr.msra.gmra.mrb[12].mxu0 %vm906_vm3, %v2348_v14 }
0x1237   : > { %v2422_v15 = vpop.f32.mrb[12].mxu0 }
0x1238   : > { %2426 = vst [vmem:[%s733_s25] sm:$0x1] %v2422_v15  ;;  %v2738_v16 = vpop.f32.mrb[13].mxu0 }
0x1239 PF: > { %s34_s5 = sadd.s32 1, %s2877_s5  }
0x123a   : > { %p31_p4 = scmp.ge.s32.totalorder %s34_s5, 4  }
0x123c   :  { %33 = sbr.rel (!%p31_p4) target bundleno = 10 (0xa), region = 146 }

</bundles_post_ra>
